<compile_context>
chip_gen: v7x
topology: tpu7x:2x2x1
jax: 0.10.0
libtpu: 0.0.40
codegen_flags: <defaults>
</compile_context>

<pallas_src>
import jax
import jax.numpy as jnp
from jax.experimental import pallas as pl
from jax.experimental.pallas import tpu as pltpu


# ---------------------------------------------------------------------------
# Tiling policy
# ---------------------------------------------------------------------------
# Lanes processed per grid step.  16384 lanes/step moves ~1.3 MiB (f32 in+out)
# per step, so the fixed ~0.35 us per-step cost is <~30% of the step's HBM time
# on v6e (<20% v5e, ~45% v7x), and double-buffered in/out blocks + the
# (D, lane_tile) f32 hidden temp stay around ~8 MiB — inside the default scoped
# VMEM limit on every generation.  (v7x could go to 32768 + pl.Buffered(3); kept
# conservative here so no vmem_limit_bytes override is required anywhere.)
_LANE_TILE_CAP = 16384
# At or below this many lanes a single full-width block is used (block equals the
# full array dim, so the (8,128) constraint never forces padding).
_SINGLE_TILE_MAX_LANES = 4096
# Below this many lanes the pallas_call fixed cost (+ any boundary relayout)
# exceeds the useful work; use the fused XLA path instead.
_MIN_PALLAS_LANES = 1024


def _round_up(x: int, m: int) -> int:
    return ((x + m - 1) // m) * m


def _choose_lane_tile(num_lanes: int) -> int:
    """Adaptive lane tile: full-width for small L, else >=2 steps capped at 16K."""
    if num_lanes <= _SINGLE_TILE_MAX_LANES:
        return num_lanes                       # one block == full dims (always legal)
    # At least two grid steps so the "parallel" lane axis shards across both
    # TensorCores on v7x; at most _LANE_TILE_CAP lanes per step.
    return min(_LANE_TILE_CAP, _round_up(pl.cdiv(num_lanes, 2), 128))


# ---------------------------------------------------------------------------
# Kernel
# ---------------------------------------------------------------------------
def _traj_kernel(x_ref, w1_ref, b1_ref, w2_ref, b2_ref, o_ref):
    """One grid step = one lane tile of (coord, batch) columns.

    x_ref : (T_obs, LT)  f32  observed trajectories, lane-dense (column = c*B + b)
    w1_ref: (D, T_obs)   bf16 temporal encoder weights   (VMEM-resident)
    b1_ref: (D, 1)       f32  encoder bias
    w2_ref: (T_pred, D)  bf16 temporal decoder weights   (VMEM-resident)
    b2_ref: (T_pred, 1)  f32  decoder bias
    o_ref : (T_pred, LT) f32  predicted trajectories, lane-dense
    """
    x = x_ref[...]                                   # (T_obs, LT) f32
    t_obs = x.shape[0]

    # --- preprocess: MOVE (translate so the last observed point is the origin).
    # Kept in f32 on the VPU (absolute coordinates may be large; v5e has no bf16 VPU).
    ref_pt = x[t_obs - 1:t_obs, :]                   # (1, LT)
    xc = x - ref_pt                                  # (T_obs, LT) f32, small values

    # --- forward: 2-layer temporal MLP over the time axis (MXU hot path).
    # bf16 operands (centered, so precision loss is negligible), f32 accumulation.
    h = jnp.dot(w1_ref[...], xc.astype(jnp.bfloat16),
                preferred_element_type=jnp.float32) + b1_ref[...]   # (D, LT) f32
    h = jnp.maximum(h, 0.0)
    y = jnp.dot(w2_ref[...], h.astype(jnp.bfloat16),
                preferred_element_type=jnp.float32) + b2_ref[...]   # (T_pred, LT) f32

    # --- postprocess: inverse MOVE (translate back), fused with the lane-dense store.
    o_ref[...] = y + ref_pt


def _slab_forward(x_slab, w1_bf16, b1, w2_bf16, b2, *, lane_tile):
    """x_slab: (T_obs, L) lane-dense slab -> (T_pred, L) slab."""
    T_obs, L = x_slab.shape
    D = w1_bf16.shape[0]
    T_pred = w2_bf16.shape[0]
    # cdiv grid: a partial trailing tile (L not a multiple of lane_tile) is handled
    # by Pallas boundary masking — no host-side padding pass, no wasted columns.
    grid = pl.cdiv(L, lane_tile)

    return pl.pallas_call(
        _traj_kernel,
        out_shape=jax.ShapeDtypeStruct((T_pred, L), jnp.float32),
        grid_spec=pltpu.PrefetchScalarGridSpec(
            num_scalar_prefetch=0,
            grid=(grid,),
            in_specs=[
                pl.BlockSpec((T_obs, lane_tile), lambda l: (0, l)),
                # Weights / biases: constant index_map -> resident in VMEM across steps.
                pl.BlockSpec((D, T_obs), lambda l: (0, 0)),
                pl.BlockSpec((D, 1), lambda l: (0, 0)),
                pl.BlockSpec((T_pred, D), lambda l: (0, 0)),
                pl.BlockSpec((T_pred, 1), lambda l: (0, 0)),
            ],
            out_specs=pl.BlockSpec((T_pred, lane_tile), lambda l: (0, l)),
        ),
        compiler_params=pltpu.CompilerParams(
            dimension_semantics=("parallel",)),     # lane tiles shard across TCs
    )(x_slab, w1_bf16, b1, w2_bf16, b2)


# ---------------------------------------------------------------------------
# Public entry points
# ---------------------------------------------------------------------------
@jax.jit
def trajectory_model_slab(x_slab, w1, b1, w2, b2):
    """Hot path (persistent lane-dense layout): (T_obs, L) f32 -> (T_pred, L) f32.

    L = C*B with lane index = c*B + b.  A model that keeps this slab as its
    persistent trajectory layout pays zero relayout traffic around the kernel.
    """
    T_obs, L = x_slab.shape
    lane_tile = _choose_lane_tile(L)                 # static under jit
    return _slab_forward(x_slab, w1.astype(jnp.bfloat16), b1,
                         w2.astype(jnp.bfloat16), b2, lane_tile=lane_tile)


def _reference(x, w1, b1, w2, b2):
    """Fused XLA path / numerical reference (same bf16-operand matmul recipe)."""
    ref_pt = x[:, -1:, :]                            # (B, 1, C)
    xc = x - ref_pt                                  # f32
    h = jnp.einsum('dt,btc->bdc', w1.astype(jnp.bfloat16), xc.astype(jnp.bfloat16),
                   preferred_element_type=jnp.float32) + b1[None]
    h = jnp.maximum(h, 0.0)
    y = jnp.einsum('pd,bdc->bpc', w2.astype(jnp.bfloat16), h.astype(jnp.bfloat16),
                   preferred_element_type=jnp.float32) + b2[None]
    return y + ref_pt


@jax.jit
def trajectory_model(x, w1, b1, w2, b2):
    """Compatibility wrapper for natural layout: (B, T_obs, C) -> (B, T_pred, C).

    The transpose to/from the lane-dense slab here is boundary layout plumbing;
    it disappears entirely when the caller adopts `trajectory_model_slab` as the
    persistent layout (review option (a)).
    """
    B, T_obs, C = x.shape
    T_pred = w2.shape[0]
    L = B * C
    if L < _MIN_PALLAS_LANES:
        # Small-problem fallback: pallas_call fixed cost + relayout > useful work.
        return _reference(x, w1, b1, w2, b2)

    x_slab = jnp.transpose(x, (1, 2, 0)).reshape(T_obs, L)        # lane = c*B + b
    y_slab = _slab_forward(x_slab, w1.astype(jnp.bfloat16), b1,
                           w2.astype(jnp.bfloat16), b2,
                           lane_tile=_choose_lane_tile(L))
    return jnp.transpose(y_slab.reshape(T_pred, C, B), (2, 0, 1))


# Test-only helpers for moving between layouts.
def _to_slab(x):
    B, T, C = x.shape
    return jnp.transpose(x, (1, 2, 0)).reshape(T, C * B)


def _from_slab(y_slab, B, C):
    T = y_slab.shape[0]
    return jnp.transpose(y_slab.reshape(T, C, B), (2, 0, 1))


if __name__ == "__main__":
    # Shapes consistent with a trajectory-prediction model:
    # obs_frames=8, pred_frames=12, anntype dim=2 (x/y), feature_dim=32.
    T_OBS, T_PRED, C, D = 8, 12, 2, 32

    key = jax.random.PRNGKey(0)
    k1, k2, kx1, kx2, kx3 = jax.random.split(key, 5)

    # Deterministic synthetic parameters (no checkpoint load).
    w1 = 0.1 * jax.random.normal(k1, (D, T_OBS), dtype=jnp.float32)
    b1 = jnp.zeros((D, 1), dtype=jnp.float32)
    w2 = 0.1 * jax.random.normal(k2, (T_PRED, D), dtype=jnp.float32)
    b2 = jnp.zeros((T_PRED, 1), dtype=jnp.float32)

    # --- Case A: natural-layout wrapper, single full-width lane tile (L=4096). ---
    B_a = 2048
    x_a = 5.0 + jax.random.normal(kx1, (B_a, T_OBS, C), dtype=jnp.float32)
    out_a = jax.block_until_ready(trajectory_model(x_a, w1, b1, w2, b2))
    ref_a = _reference(x_a, w1, b1, w2, b2)
    assert out_a.shape == (B_a, T_PRED, C)
    assert jnp.allclose(out_a, ref_a, atol=1e-3, rtol=1e-3), "case A mismatch"

    # --- Case B: persistent-slab hot path, multi-step parallel lane grid. -------
    B_b = 49152                                   # L = 98304 = 6 x 16384 lane tiles
    x_b = jax.random.normal(kx2, (B_b, T_OBS, C), dtype=jnp.float32)
    x_b_slab = _to_slab(x_b)                      # persistent layout (test plumbing)
    y_b_slab = jax.block_until_ready(trajectory_model_slab(x_b_slab, w1, b1, w2, b2))
    out_b = _from_slab(y_b_slab, B_b, C)
    ref_b = _reference(x_b, w1, b1, w2, b2)
    assert y_b_slab.shape == (T_PRED, B_b * C)
    assert jnp.allclose(out_b, ref_b, atol=1e-3, rtol=1e-3), "case B mismatch"

    # --- Case C: tiny batch exercises the small-problem fallback dispatch. ------
    B_c = 64
    x_c = jax.random.normal(kx3, (B_c, T_OBS, C), dtype=jnp.float32)
    out_c = jax.block_until_ready(trajectory_model(x_c, w1, b1, w2, b2))
    ref_c = _reference(x_c, w1, b1, w2, b2)
    assert out_c.shape == (B_c, T_PRED, C)
    assert jnp.allclose(out_c, ref_c, atol=1e-3, rtol=1e-3), "case C mismatch"

    print("KERNEL_OK")
</pallas_src>

<mosaic_0001>
module attributes {stable_mosaic.version = 11 : i64} {
  func.func @_traj_kernel(%arg0: i32, %arg1: memref<8x4096xf32, #tpu.memory_space<vmem>>, %arg2: memref<32x8xbf16, #tpu.memory_space<vmem>>, %arg3: memref<32x1xf32, #tpu.memory_space<vmem>>, %arg4: memref<12x32xbf16, #tpu.memory_space<vmem>>, %arg5: memref<12x1xf32, #tpu.memory_space<vmem>>, %arg6: memref<12x4096xf32, #tpu.memory_space<vmem>>) attributes {dimension_semantics = [#tpu.dimension_semantics<parallel>], iteration_bounds = array<i64: 1>, scalar_prefetch = 0 : i64, scratch_operands = 0 : i64, tpu.core_type = #tpu.core_type<tc>, window_params = [{transform_indices = @transform_0, window_bounds = array<i64: 8, 4096>}, {pipeline_mode = #tpu.pipeline_mode<synchronous>, transform_indices = @transform_1, window_bounds = array<i64: 32, 8>}, {pipeline_mode = #tpu.pipeline_mode<synchronous>, transform_indices = @transform_2, window_bounds = array<i64: 32, 1>}, {pipeline_mode = #tpu.pipeline_mode<synchronous>, transform_indices = @transform_3, window_bounds = array<i64: 12, 32>}, {pipeline_mode = #tpu.pipeline_mode<synchronous>, transform_indices = @transform_4, window_bounds = array<i64: 12, 1>}, {transform_indices = @transform_5, window_bounds = array<i64: 12, 4096>}]} {
    %c0 = arith.constant 0 : index
    %c0_0 = arith.constant 0 : index
    %0 = vector.load %arg1[%c0, %c0_0] : memref<8x4096xf32, #tpu.memory_space<vmem>>, vector<8x4096xf32>
    %1 = vector.extract_strided_slice %0 {offsets = [7, 0], sizes = [1, 4096], strides = [1, 1]} : vector<8x4096xf32> to vector<1x4096xf32>
    %2 = vector.broadcast %1 : vector<1x4096xf32> to vector<8x4096xf32>
    %3 = arith.subf %0, %2 : vector<8x4096xf32>
    %c0_1 = arith.constant 0 : index
    %c0_2 = arith.constant 0 : index
    %4 = vector.load %arg2[%c0_1, %c0_2] : memref<32x8xbf16, #tpu.memory_space<vmem>>, vector<32x8xbf16>
    %5 = arith.truncf %3 : vector<8x4096xf32> to vector<8x4096xbf16>
    %cst = arith.constant dense<0.000000e+00> : vector<32x4096xf32>
    %6 = tpu.matmul %4, %5, %cst {dimension_numbers = #tpu.dot_dimension_numbers<[1], [0], [0], [1], [0, 0, 1, 1], [], []>} : vector<32x8xbf16>, vector<8x4096xbf16>, vector<32x4096xf32> -> vector<32x4096xf32>
    %c0_3 = arith.constant 0 : index
    %c0_4 = arith.constant 0 : index
    %7 = vector.load %arg3[%c0_3, %c0_4] : memref<32x1xf32, #tpu.memory_space<vmem>>, vector<32x1xf32>
    %8 = vector.broadcast %7 : vector<32x1xf32> to vector<32x4096xf32>
    %9 = arith.addf %6, %8 : vector<32x4096xf32>
    %cst_5 = arith.constant 0.000000e+00 : f32
    %10 = vector.broadcast %cst_5 : f32 to vector<32x4096xf32>
    %11 = arith.maximumf %9, %10 : vector<32x4096xf32>
    %c0_6 = arith.constant 0 : index
    %c0_7 = arith.constant 0 : index
    %12 = vector.load %arg4[%c0_6, %c0_7] : memref<12x32xbf16, #tpu.memory_space<vmem>>, vector<12x32xbf16>
    %13 = arith.truncf %11 : vector<32x4096xf32> to vector<32x4096xbf16>
    %cst_8 = arith.constant dense<0.000000e+00> : vector<12x4096xf32>
    %14 = tpu.matmul %12, %13, %cst_8 {dimension_numbers = #tpu.dot_dimension_numbers<[1], [0], [0], [1], [0, 0, 1, 1], [], []>} : vector<12x32xbf16>, vector<32x4096xbf16>, vector<12x4096xf32> -> vector<12x4096xf32>
    %c0_9 = arith.constant 0 : index
    %c0_10 = arith.constant 0 : index
    %15 = vector.load %arg5[%c0_9, %c0_10] : memref<12x1xf32, #tpu.memory_space<vmem>>, vector<12x1xf32>
    %16 = vector.broadcast %15 : vector<12x1xf32> to vector<12x4096xf32>
    %17 = arith.addf %14, %16 : vector<12x4096xf32>
    %18 = vector.broadcast %1 : vector<1x4096xf32> to vector<12x4096xf32>
    %19 = arith.addf %17, %18 : vector<12x4096xf32>
    %c0_11 = arith.constant 0 : index
    %c0_12 = arith.constant 0 : index
    %20 = vector.load %arg6[%c0_11, %c0_12] : memref<12x4096xf32, #tpu.memory_space<vmem>>, vector<12x4096xf32>
    tpu.vector_store %arg6[%c0_11, %c0_12], %19 {strides = array<i32>} : memref<12x4096xf32, #tpu.memory_space<vmem>>, vector<12x4096xf32>,
    return
  }
  func.func @transform_0(%arg0: i32) -> (i32, i32) {
    %c0_i32 = arith.constant 0 : i32
    %c0_i32_0 = arith.constant 0 : i32
    return %c0_i32, %arg0 : i32, i32
  }
  func.func @transform_1(%arg0: i32) -> (i32, i32) {
    %c0_i32 = arith.constant 0 : i32
    %c0_i32_0 = arith.constant 0 : i32
    %c0_i32_1 = arith.constant 0 : i32
    return %c0_i32, %c0_i32_0 : i32, i32
  }
  func.func @transform_2(%arg0: i32) -> (i32, i32) {
    %c0_i32 = arith.constant 0 : i32
    %c0_i32_0 = arith.constant 0 : i32
    %c0_i32_1 = arith.constant 0 : i32
    return %c0_i32, %c0_i32_0 : i32, i32
  }
  func.func @transform_3(%arg0: i32) -> (i32, i32) {
    %c0_i32 = arith.constant 0 : i32
    %c0_i32_0 = arith.constant 0 : i32
    %c0_i32_1 = arith.constant 0 : i32
    return %c0_i32, %c0_i32_0 : i32, i32
  }
  func.func @transform_4(%arg0: i32) -> (i32, i32) {
    %c0_i32 = arith.constant 0 : i32
    %c0_i32_0 = arith.constant 0 : i32
    %c0_i32_1 = arith.constant 0 : i32
    return %c0_i32, %c0_i32_0 : i32, i32
  }
  func.func @transform_5(%arg0: i32) -> (i32, i32) {
    %c0_i32 = arith.constant 0 : i32
    %c0_i32_0 = arith.constant 0 : i32
    return %c0_i32, %arg0 : i32, i32
  }
}

</mosaic_0001>

<bundles_post_ra>
// kernel: trajectory_model.1
= control target key start
LH: loop header
LB: loop body
LE: loop exit
PB: predicated region body
PF: predicated region fallthrough
CT: control target
= control target key end

     0   :  { %v53_v0 = vlaneseq  ;;  %v2343_v3 = vmov 0   ;;  %vm290_vm0 = vcmask 1043456   ;;  %vm283_vm1 = vcmask 64512   ;;  %s3311_s0 = inlined_call_operand.vmem [shape: f32[8,4096], index: 0, kind: input, shape index: {}]   ;;  %s3312_s1 = inlined_call_operand.vmem [shape: bf16[32,8], index: 1, kind: input, shape index: {}]   ;;  %s3313_s2 = inlined_call_operand.vmem [shape: f32[32,1], index: 2, kind: input, shape index: {}]   ;;  %s3314_s4 = inlined_call_operand.vmem [shape: f32[12,1], index: 4, kind: input, shape index: {}]   ;;  %s3315_s3 = inlined_call_operand.vmem [shape: bf16[12,32], index: 3, kind: input, shape index: {}]   ;;  %s3316_s5 = inlined_call_operand.vmem [shape: f32[12,4096], index: 5, kind: output, shape index: {}]  }
   0x1   :  { %v22_v1 = vld [vmem:[%s3311_s0 + $0x8] sm:$0xff]  ;;  %v24_v2 = vld [vmem:[%s3311_s0 + $0x18] sm:$0xff]  ;;  %419 = vmatprep.mubr.bf16.mxu0 %v2343_v3  ;;  %472 = vmatprep.mubr.bf16.mxu1 %v2343_v3  ;;  %v21_v5 = vld [vmem:[%s3311_s0] sm:$0xff]  ;;  %vm1446_vm2 = vcmask 261120  }
   0x2   :  { %v54_v4 = vshrl.u32 %v53_v0, 7  ;;  %2338 = vset.pattern.permute.xlu0 %v2343_v3  ;;  %2339 = vset.pattern.permute.xlu1 %v2343_v3  ;;  %v23_v6 = vld [vmem:[%s3311_s0 + $0x10] sm:$0xff]  ;;  %v26_v7 = vld [vmem:[%s3311_s0 + $0x28] sm:$0xff]  ;;  %v28_v8 = vld [vmem:[%s3311_s0 + $0x38] sm:$0xff] }
   0x3   :  { %v25_v10 = vld [vmem:[%s3311_s0 + $0x20] sm:$0xff]  ;;  %v27_v11 = vld [vmem:[%s3311_s0 + $0x30] sm:$0xff]  ;;  %v30_v28 = vld [vmem:[%s3311_s0 + $0x48] sm:$0xff] }
   0x4   :  { %v2396_v9 = vsub.s32 7, %v54_v4  ;;  %v32_v29 = vld [vmem:[%s3311_s0 + $0x58] sm:$0xff]  ;;  %v2449_v40 = vld [vmem:[%s3312_s1] sm:$0xff]   ;;  %v31_v49 = vld [vmem:[%s3311_s0 + $0x50] sm:$0xff] }
   0x5   :  { %v249_v43 = vld [vmem:[%s3313_s2] sm:$0xff]  ;;  %v250_v53 = vld [vmem:[%s3313_s2 + $0x8] sm:$0xff]  ;;  %v251_v56 = vld [vmem:[%s3313_s2 + $0x10] sm:$0xff] }
   0x6   :  { %v2405_v12 = vrot.slane %v22_v1, %v2396_v9  ;;  %v2408_v13 = vrot.slane %v24_v2, %v2396_v9  ;;  %v2411_v14 = vrot.slane %v21_v5, %v2396_v9  ;;  %v2414_v15 = vrot.slane %v23_v6, %v2396_v9  ;;  %v29_v48 = vld [vmem:[%s3311_s0 + $0x40] sm:$0xff]  ;;  %255 = vperm.xlu0 %2338, %v249_v43   ;;  %v34_v55 = vld [vmem:[%s3311_s0 + $0x68] sm:$0xff]  ;;  %v36_v58 = vld [vmem:[%s3311_s0 + $0x78] sm:$0xff] }
   0x7   :  { %v2417_v16 = vrot.slane %v26_v7, %v2396_v9  ;;  %v2420_v17 = vrot.slane %v28_v8, %v2396_v9  ;;  %v2423_v18 = vrot.slane %v25_v10, %v2396_v9  ;;  %v2426_v19 = vrot.slane %v27_v11, %v2396_v9  ;;  %v2498_v57 = vld [vmem:[%s3312_s1 + $0x8] sm:$0xff]   ;;  %v2510_v61 = vld [vmem:[%s3311_s0 + $0xa0] sm:$0xff]  ;;  %265 = vperm.xlu1 %2339, %v251_v56   ;;  %v2516_v63 = vld [vmem:[%s3311_s0 + $0xb0] sm:$0xff] }
   0x8   :  { %v182_v20 = vsub.f32 %v22_v1, %v2405_v12  ;;  %v184_v21 = vsub.f32 %v24_v2, %v2408_v13  ;;  %v181_v22 = vsub.f32 %v21_v5, %v2411_v14  ;;  %v183_v23 = vsub.f32 %v23_v6, %v2414_v15  ;;  %v2524_v1 = vld [vmem:[%s3311_s0 + $0xc8] sm:$0xff]  ;;  %v252_v2 = vld [vmem:[%s3313_s2 + $0x18] sm:$0xff]  ;;  %v1429_v4 = vld [vmem:[%s3314_s4] sm:$0xff] }
   0x9   :  { %v186_v24 = vsub.f32 %v26_v7, %v2417_v16  ;;  %v188_v25 = vsub.f32 %v28_v8, %v2420_v17  ;;  %v185_v26 = vsub.f32 %v25_v10, %v2423_v18  ;;  %v187_v27 = vsub.f32 %v27_v11, %v2426_v19  ;;  %v2543_v6 = vld [vmem:[%s3311_s0 + $0xd8] sm:$0xff]  ;;  %v2548_v7 = vld [vmem:[%s3311_s0 + $0xc0] sm:$0xff]  ;;  %v2553_v8 = vld [vmem:[%s3311_s0 + $0xd0] sm:$0xff] }
   0xa   :  { %v218_v30 = vpack.c.bf16 %v182_v20, %v182_v20  ;;  %v220_v31 = vpack.c.bf16 %v184_v21, %v184_v21  ;;  %v217_v32 = vpack.c.bf16 %v181_v22, %v181_v22  ;;  %v219_v33 = vpack.c.bf16 %v183_v23, %v183_v23  ;;  %260 = vperm.xlu0 %2338, %v250_v53   ;;  %v2561_v20 = vld [vmem:[%s3311_s0 + $0xe8] sm:$0xff] }
   0xb   :  { %v222_v34 = vpack.c.bf16 %v186_v24, %v186_v24  ;;  %v224_v35 = vpack.c.bf16 %v188_v25, %v188_v25  ;;  %v221_v36 = vpack.c.bf16 %v185_v26, %v185_v26  ;;  %v223_v37 = vpack.c.bf16 %v187_v27, %v187_v27  ;;  %270 = vperm.xlu1 %2339, %v252_v2   ;;  %v2574_v24 = vld [vmem:[%s3311_s0 + $0xf8] sm:$0xff] }
   0xc   :  { %2272 = vmatprep.subr.msk.bf16.mxu0 %vm290_vm0, %v218_v30  ;;  %2275 = vmatprep.subr.msk.bf16.mxu1 %vm290_vm0, %v220_v31  ;;  %v292_v38 = vsel %vm290_vm0, %v217_v32, 0  ;;  %v298_v39 = vsel %vm290_vm0, %v219_v33, 0  ;;  %v2452_v41 = vrot.slane %v30_v28, %v2396_v9  ;;  %v2455_v42 = vrot.slane %v32_v29, %v2396_v9  ;;  %v2603_v32 = vld [vmem:[%s3311_s0 + $0xe0] sm:$0xff]  ;;  %v2608_v33 = vld [vmem:[%s3311_s0 + $0xf0] sm:$0xff] }
   0xd   :  { %388 = vmatpush1.bf16.msra.mxu0 %v292_v38  ;;  %441 = vmatpush1.bf16.msra.mxu1 %v298_v39  ;;  %v304_v44 = vsel %vm290_vm0, %v221_v36, 0  ;;  %v310_v45 = vsel %vm290_vm0, %v223_v37, 0  ;;  %v2477_v52 = vrot.slane %v29_v48, %v2396_v9  ;;  %v2485_v54 = vrot.slane %v31_v49, %v2396_v9  ;;  %v33_v38 = vld [vmem:[%s3311_s0 + $0x60] sm:$0xff]  ;;  %v35_v39 = vld [vmem:[%s3311_s0 + $0x70] sm:$0xff] }
   0xe   :  { %2278 = vmatprep.subr.msk.bf16.mxu0 %vm290_vm0, %v222_v34  ;;  %2281 = vmatprep.subr.msk.bf16.mxu1 %vm290_vm0, %v224_v35  ;;  %v190_v46 = vsub.f32 %v30_v28, %v2452_v41  ;;  %v192_v47 = vsub.f32 %v32_v29, %v2455_v42  ;;  %v2505_v60 = vrot.slane %v34_v55, %v2396_v9  ;;  %v1430_v29 = vld [vmem:[%s3314_s4 + $0x8] sm:$0xf] }
   0xf   :  { %v189_v59 = vsub.f32 %v29_v48, %v2477_v52  ;;  %v191_v62 = vsub.f32 %v31_v49, %v2485_v54  ;;  %v2519_v0 = vrot.slane %v36_v58, %v2396_v9  ;;  %v2538_v5 = vrot.slane %v2510_v61, %v2396_v9  ;;  %1433 = vperm.xlu0 %2338, %v1429_v4   ;;  %v40_v48 = vld [vmem:[%s3311_s0 + $0x98] sm:$0xff] }
  0x10   :  { %2273 = vmatmul.mubr.msk.bf16.vlgmr.msra.gmra.mrb[0].mxu0 %vm283_vm1, %v2449_v40  ;;  %2276 = vmatmul.mubr.msk.bf16.vlgmr.msra.gmra.mrb[0].mxu1 %vm283_vm1, %v2449_v40  ;;  %v226_v50 = vpack.c.bf16 %v190_v46, %v190_v46  ;;  %v228_v51 = vpack.c.bf16 %v192_v47, %v192_v47  ;;  %v194_v11 = vsub.f32 %v34_v55, %v2505_v60  ;;  %v38_v47 = vld [vmem:[%s3311_s0 + $0x88] sm:$0xff] }
  0x11   :  { %494 = vmatpush1.bf16.msra.mxu0 %v304_v44  ;;  %547 = vmatpush1.bf16.msra.mxu1 %v310_v45  ;;  %v225_v10 = vpack.c.bf16 %v189_v59, %v189_v59  ;;  %v227_v21 = vpack.c.bf16 %v191_v62, %v191_v62  ;;  %v2565_v22 = vrot.slane %v2516_v63, %v2396_v9 }
  0x12   :  { %429 = vmatprep.mubr.bf16.mxu0 %v2343_v3  ;;  %482 = vmatprep.mubr.bf16.mxu1 %v2343_v3  ;;  %v2569_v23 = vrot.slane %v2524_v1, %v2396_v9  ;;  %v196_v25 = vsub.f32 %v36_v58, %v2519_v0  ;;  %v2579_v26 = vrot.slane %v2543_v6, %v2396_v9 }
  0x13   :  { %2284 = vmatprep.subr.msk.bf16.mxu0 %vm290_vm0, %v226_v50  ;;  %2287 = vmatprep.subr.msk.bf16.mxu1 %vm290_vm0, %v228_v51  ;;  %v2583_v27 = vrot.slane %v2548_v7, %v2396_v9  ;;  %v2587_v28 = vrot.slane %v2553_v8, %v2396_v9  ;;  %v2594_v30 = vrot.slane %v2561_v20, %v2396_v9  ;;  %v316_v34 = vsel %vm290_vm0, %v225_v10, 0 }
  0x14   :  { %v2598_v31 = vrot.slane %v2574_v24, %v2396_v9  ;;  %v322_v35 = vsel %vm290_vm0, %v227_v21, 0  ;;  %1438 = vperm.xlu1 %2339, %v1430_v29   ;;  %v230_v36 = vpack.c.bf16 %v194_v11, %v194_v11  ;;  %v232_v37 = vpack.c.bf16 %v196_v25, %v196_v25  ;;  %v37_v11 = vld [vmem:[%s3311_s0 + $0x80] sm:$0xff]  ;;  %v39_v21 = vld [vmem:[%s3311_s0 + $0x90] sm:$0xff] }
  0x15   :  { %v2624_v43 = vrot.slane %v2603_v32, %v2396_v9  ;;  %v2628_v44 = vrot.slane %v2608_v33, %v2396_v9  ;;  %v2633_v45 = vrot.slane %v33_v38, %v2396_v9  ;;  %v2636_v46 = vrot.slane %v35_v39, %v2396_v9 }
  0x16   :  { %v2649_v51 = vrot.slane %v38_v47, %v2396_v9  ;;  %v2652_v53 = vrot.slane %v40_v48, %v2396_v9  ;;  %v2677_v25 = vrot.slane %v37_v11, %v2396_v9  ;;  %v2680_v29 = vrot.slane %v39_v21, %v2396_v9 }
  0x17   :  { %v193_v49 = vsub.f32 %v33_v38, %v2633_v45  ;;  %v195_v50 = vsub.f32 %v35_v39, %v2636_v46 }
  0x18   :  { %2274 = vmatmul.mubr.msk.bf16.gmra.mrb[4].mxu0 %vm283_vm1, %v2498_v57  ;;  %2277 = vmatmul.mubr.msk.bf16.gmra.mrb[4].mxu1 %vm283_vm1, %v2498_v57  ;;  %v198_v58 = vsub.f32 %v38_v47, %v2649_v51  ;;  %v200_v59 = vsub.f32 %v40_v48, %v2652_v53 }
  0x19   :  { %525 = vmatprep.mubr.bf16.mxu0 %v2343_v3  ;;  %578 = vmatprep.mubr.bf16.mxu1 %v2343_v3  ;;  %v229_v55 = vpack.c.bf16 %v193_v49, %v193_v49  ;;  %v231_v56 = vpack.c.bf16 %v195_v50, %v195_v50 }
  0x1a   :  { %v234_v4 = vpack.c.bf16 %v198_v58, %v198_v58  ;;  %v236_v10 = vpack.c.bf16 %v200_v59, %v200_v59  ;;  %v201_v59 = vsub.f32 %v2510_v61, %v2538_v5  ;;  %v208_v61 = vsub.f32 %v2543_v6, %v2579_v26 }
  0x1b   :  { %v328_v62 = vsel %vm290_vm0, %v229_v55, 0  ;;  %v334_v2 = vsel %vm290_vm0, %v231_v56, 0  ;;  %v207_v6 = vsub.f32 %v2553_v8, %v2587_v28 }
  0x20   :  { %2279 = vmatmul.mubr.msk.bf16.vlgmr.msra.gmra.mrb[8].mxu0 %vm283_vm1, %v2449_v40  ;;  %2282 = vmatmul.mubr.msk.bf16.vlgmr.msra.gmra.mrb[8].mxu1 %vm283_vm1, %v2449_v40 }
  0x21   :  { %600 = vmatpush1.bf16.msra.mxu0 %v316_v34  ;;  %653 = vmatpush1.bf16.msra.mxu1 %v322_v35  ;;  %v42_v34 = vld [vmem:[%s3311_s0 + $0xa8] sm:$0xff]  ;;  %v44_v35 = vld [vmem:[%s3311_s0 + $0xb8] sm:$0xff] }
  0x22   :  { %535 = vmatprep.mubr.bf16.mxu0 %v2343_v3  ;;  %588 = vmatprep.mubr.bf16.mxu1 %v2343_v3  ;;  %v2693_v38 = vrot.slane %v42_v34, %v2396_v9  ;;  %v2696_v39 = vrot.slane %v44_v35, %v2396_v9 }
  0x23   :  { %2290 = vmatprep.subr.msk.bf16.mxu0 %vm290_vm0, %v230_v36  ;;  %2293 = vmatprep.subr.msk.bf16.mxu1 %vm290_vm0, %v232_v37  ;;  %v197_v36 = vsub.f32 %v37_v11, %v2677_v25  ;;  %v199_v37 = vsub.f32 %v39_v21, %v2680_v29 }
  0x24   :  { %v202_v49 = vsub.f32 %v42_v34, %v2693_v38  ;;  %v204_v50 = vsub.f32 %v44_v35, %v2696_v39  ;;  %v244_v34 = vpack.c.bf16 %v208_v61, %v208_v61 }
  0x25   :  { %v233_v47 = vpack.c.bf16 %v197_v36, %v197_v36  ;;  %v235_v48 = vpack.c.bf16 %v199_v37, %v199_v37  ;;  %v243_v36 = vpack.c.bf16 %v207_v6, %v207_v6  ;;  %v210_v37 = vsub.f32 %v2561_v20, %v2594_v30 }
  0x26   :  { %v238_v56 = vpack.c.bf16 %v202_v49, %v202_v49  ;;  %v240_v58 = vpack.c.bf16 %v204_v50, %v204_v50  ;;  %v209_v20 = vsub.f32 %v2603_v32, %v2624_v43 }
  0x27   :  { %v340_v55 = vsel %vm290_vm0, %v233_v47, 0  ;;  %v346_v9 = vsel %vm290_vm0, %v235_v48, 0  ;;  %v370_v47 = vsel %vm290_vm0, %v243_v36, 0  ;;  %v246_v48 = vpack.c.bf16 %v210_v37, %v210_v37 }
  0x28   :  { %2280 = vmatmul.mubr.msk.bf16.gmra.mrb[12].mxu0 %vm283_vm1, %v2498_v57  ;;  %2283 = vmatmul.mubr.msk.bf16.gmra.mrb[12].mxu1 %vm283_vm1, %v2498_v57  ;;  %v245_v50 = vpack.c.bf16 %v209_v20, %v209_v20 }
  0x29   :  { %631 = vmatprep.mubr.bf16.mxu0 %v2343_v3  ;;  %684 = vmatprep.mubr.bf16.mxu1 %v2343_v3 }
  0x30   :  { %2285 = vmatmul.mubr.msk.bf16.vlgmr.msra.gmra.mrb[16].mxu0 %vm283_vm1, %v2449_v40  ;;  %2288 = vmatmul.mubr.msk.bf16.vlgmr.msra.gmra.mrb[16].mxu1 %vm283_vm1, %v2449_v40 }
  0x31   :  { %706 = vmatpush1.bf16.msra.mxu0 %v328_v62  ;;  %759 = vmatpush1.bf16.msra.mxu1 %v334_v2  ;;  %v203_v62 = vsub.f32 %v2516_v63, %v2565_v22  ;;  %v237_v2 = vpack.c.bf16 %v201_v59, %v201_v59 }
  0x32   :  { %641 = vmatprep.mubr.bf16.mxu0 %v2343_v3  ;;  %694 = vmatprep.mubr.bf16.mxu1 %v2343_v3 }
  0x33   :  { %2296 = vmatprep.subr.msk.bf16.mxu0 %vm290_vm0, %v234_v4  ;;  %2299 = vmatprep.subr.msk.bf16.mxu1 %vm290_vm0, %v236_v10  ;;  %v239_v4 = vpack.c.bf16 %v203_v62, %v203_v62  ;;  %v206_v10 = vsub.f32 %v2524_v1, %v2569_v23  ;;  %v352_v63 = vsel %vm290_vm0, %v237_v2, 0  ;;  %v205_v1 = vsub.f32 %v2548_v7, %v2583_v27 }
  0x34   :  { %v212_v7 = vsub.f32 %v2574_v24, %v2598_v31  ;;  %v211_v24 = vsub.f32 %v2608_v33, %v2628_v44 }
  0x35   :  { %v358_v11 = vsel %vm290_vm0, %v239_v4, 0  ;;  %v242_v21 = vpack.c.bf16 %v206_v10, %v206_v10  ;;  %v241_v35 = vpack.c.bf16 %v205_v1, %v205_v1 }
  0x36   :  { %v248_v49 = vpack.c.bf16 %v212_v7, %v212_v7 }
  0x37   :  { %v364_v8 = vsel %vm290_vm0, %v241_v35, 0 }
  0x38   :  { %2286 = vmatmul.mubr.msk.bf16.gmra.mrb[20].mxu0 %vm283_vm1, %v2498_v57  ;;  %2289 = vmatmul.mubr.msk.bf16.gmra.mrb[20].mxu1 %vm283_vm1, %v2498_v57 }
  0x39   :  { %737 = vmatprep.mubr.bf16.mxu0 %v2343_v3  ;;  %790 = vmatprep.mubr.bf16.mxu1 %v2343_v3 }
  0x40   :  { %2291 = vmatmul.mubr.msk.bf16.vlgmr.msra.gmra.mrb[24].mxu0 %vm283_vm1, %v2449_v40  ;;  %2294 = vmatmul.mubr.msk.bf16.vlgmr.msra.gmra.mrb[24].mxu1 %vm283_vm1, %v2449_v40 }
  0x41   :  { %812 = vmatpush1.bf16.msra.mxu0 %v340_v55  ;;  %865 = vmatpush1.bf16.msra.mxu1 %v346_v9  ;;  %v247_v55 = vpack.c.bf16 %v211_v24, %v211_v24  ;;  %v376_v9 = vsel %vm290_vm0, %v245_v50, 0 }
  0x42   :  { %747 = vmatprep.mubr.bf16.mxu0 %v2343_v3  ;;  %800 = vmatprep.mubr.bf16.mxu1 %v2343_v3 }
  0x43   :  { %2302 = vmatprep.subr.msk.bf16.mxu0 %vm290_vm0, %v238_v56  ;;  %2305 = vmatprep.subr.msk.bf16.mxu1 %vm290_vm0, %v240_v58  ;;  %v382_v56 = vsel %vm290_vm0, %v247_v55, 0 }
  0x48   :  { %2292 = vmatmul.mubr.msk.bf16.gmra.mrb[28].mxu0 %vm283_vm1, %v2498_v57  ;;  %2295 = vmatmul.mubr.msk.bf16.gmra.mrb[28].mxu1 %vm283_vm1, %v2498_v57 }
  0x49   :  { %843 = vmatprep.mubr.bf16.mxu0 %v2343_v3  ;;  %896 = vmatprep.mubr.bf16.mxu1 %v2343_v3 }
  0x50   :  { %2297 = vmatmul.mubr.msk.bf16.vlgmr.msra.gmra.mrb[32].mxu0 %vm283_vm1, %v2449_v40  ;;  %2300 = vmatmul.mubr.msk.bf16.vlgmr.msra.gmra.mrb[32].mxu1 %vm283_vm1, %v2449_v40 }
  0x51   :  { %918 = vmatpush1.bf16.msra.mxu0 %v352_v63  ;;  %971 = vmatpush1.bf16.msra.mxu1 %v358_v11 }
  0x52   :  { %853 = vmatprep.mubr.bf16.mxu0 %v2343_v3  ;;  %906 = vmatprep.mubr.bf16.mxu1 %v2343_v3 }
  0x53   :  { %2308 = vmatprep.subr.msk.bf16.mxu0 %vm290_vm0, %v242_v21  ;;  %2311 = vmatprep.subr.msk.bf16.mxu1 %vm290_vm0, %v244_v34 }
  0x58   :  { %2298 = vmatmul.mubr.msk.bf16.gmra.mrb[36].mxu0 %vm283_vm1, %v2498_v57  ;;  %2301 = vmatmul.mubr.msk.bf16.gmra.mrb[36].mxu1 %vm283_vm1, %v2498_v57 }
  0x59   :  { %949 = vmatprep.mubr.bf16.mxu0 %v2343_v3  ;;  %1002 = vmatprep.mubr.bf16.mxu1 %v2343_v3 }
  0x60   :  { %2303 = vmatmul.mubr.msk.bf16.vlgmr.msra.gmra.mrb[40].mxu0 %vm283_vm1, %v2449_v40  ;;  %2306 = vmatmul.mubr.msk.bf16.vlgmr.msra.gmra.mrb[40].mxu1 %vm283_vm1, %v2449_v40 }
  0x61   :  { %1024 = vmatpush1.bf16.msra.mxu0 %v364_v8  ;;  %1077 = vmatpush1.bf16.msra.mxu1 %v370_v47 }
  0x62   :  { %959 = vmatprep.mubr.bf16.mxu0 %v2343_v3  ;;  %1012 = vmatprep.mubr.bf16.mxu1 %v2343_v3 }
  0x63   :  { %2314 = vmatprep.subr.msk.bf16.mxu0 %vm290_vm0, %v246_v48  ;;  %2317 = vmatprep.subr.msk.bf16.mxu1 %vm290_vm0, %v248_v49 }
  0x68   :  { %2304 = vmatmul.mubr.msk.bf16.gmra.mrb[44].mxu0 %vm283_vm1, %v2498_v57  ;;  %2307 = vmatmul.mubr.msk.bf16.gmra.mrb[44].mxu1 %vm283_vm1, %v2498_v57 }
  0x69   :  { %1055 = vmatprep.mubr.bf16.mxu0 %v2343_v3  ;;  %1108 = vmatprep.mubr.bf16.mxu1 %v2343_v3 }
  0x70   :  { %2309 = vmatmul.mubr.msk.bf16.vlgmr.msra.gmra.mrb[48].mxu0 %vm283_vm1, %v2449_v40  ;;  %2312 = vmatmul.mubr.msk.bf16.vlgmr.msra.gmra.mrb[48].mxu1 %vm283_vm1, %v2449_v40 }
  0x71   :  { %1130 = vmatpush1.bf16.msra.mxu0 %v376_v9  ;;  %1183 = vmatpush1.bf16.msra.mxu1 %v382_v56 }
  0x72   :  { %1065 = vmatprep.mubr.bf16.mxu0 %v2343_v3  ;;  %1118 = vmatprep.mubr.bf16.mxu1 %v2343_v3 }
  0x78   :  { %2310 = vmatmul.mubr.msk.bf16.gmra.mrb[52].mxu0 %vm283_vm1, %v2498_v57  ;;  %2313 = vmatmul.mubr.msk.bf16.gmra.mrb[52].mxu1 %vm283_vm1, %v2498_v57 }
  0x79   :  { %1161 = vmatprep.mubr.bf16.mxu0 %v2343_v3  ;;  %1214 = vmatprep.mubr.bf16.mxu1 %v2343_v3 }
  0x80   :  { %2315 = vmatmul.mubr.msk.bf16.vlgmr.msra.gmra.mrb[56].mxu0 %vm283_vm1, %v2449_v40  ;;  %2318 = vmatmul.mubr.msk.bf16.vlgmr.msra.gmra.mrb[56].mxu1 %vm283_vm1, %v2449_v40 }
  0x81   :  { %1171 = vmatprep.mubr.bf16.mxu0 %v2343_v3  ;;  %1224 = vmatprep.mubr.bf16.mxu1 %v2343_v3 }
  0x85   :  { %v2800_v32 = vpop.permute.xlu0 %255 }
  0x86   :  { %v2804_v58 = vpop.permute.xlu1 %265 }
  0x88   :  { %2316 = vmatmul.mubr.msk.bf16.gmra.mrb[60].mxu0 %vm283_vm1, %v2498_v57  ;;  %2319 = vmatmul.mubr.msk.bf16.gmra.mrb[60].mxu1 %vm283_vm1, %v2498_v57 }
  0x89   :  { %1482 = vmatprep.mubr.bf16.mxu0 %v2343_v3  ;;  %1525 = vmatprep.mubr.bf16.mxu1 %v2343_v3  ;;  %v2802_v33 = vpop.permute.xlu0 %260 }
  0x8a   :  { %v2814_v9 = vpop.permute.xlu1 %270 }
  0xe3   :  { %v421_v40 = vpop.f32.mrb[0].mxu0  ;;  %v474_v59 = vpop.f32.mrb[0].mxu1 }
  0xe4   :  { %v422_v62 = vadd.f32 %v421_v40, %v2800_v32  ;;  %v475_v2 = vadd.f32 %v474_v59, %v2800_v32  ;;  %v423_v4 = vpop.f32.mrb[1].mxu0  ;;  %v476_v10 = vpop.f32.mrb[1].mxu1 }
  0xe5   :  { %v424_v57 = vadd.f32 %v423_v4, %v2800_v32  ;;  %v477_v61 = vadd.f32 %v476_v10, %v2800_v32  ;;  %v425_v63 = vpop.f32.mrb[2].mxu0  ;;  %v478_v11 = vpop.f32.mrb[2].mxu1 }
  0xe6   :  { %v426_v21 = vadd.f32 %v425_v63, %v2802_v33  ;;  %v479_v34 = vadd.f32 %v478_v11, %v2802_v33  ;;  %v427_v1 = vpop.f32.mrb[3].mxu0  ;;  %v480_v6 = vpop.f32.mrb[3].mxu1  ;;  %v1235_v37 = vmax.f32 %v422_v62, 0.0  ;;  %v1237_v7 = vmax.f32 %v475_v2, 0.0 }
  0xe7   :  { %v428_v35 = vadd.f32 %v427_v1, %v2802_v33  ;;  %v481_v36 = vadd.f32 %v480_v6, %v2802_v33  ;;  %v1236_v48 = vmax.f32 %v424_v57, 0.0  ;;  %v1238_v49 = vmax.f32 %v477_v61, 0.0 }
  0xe8   :  { %v1267_v8 = vmax.f32 %v426_v21, 0.0  ;;  %v1269_v47 = vmax.f32 %v479_v34, 0.0 }
  0xe9   :  { %v1268_v20 = vmax.f32 %v428_v35, 0.0  ;;  %v1270_v24 = vmax.f32 %v481_v36, 0.0 }
  0xea   :  { %v1365_v50 = vpack.c.bf16 %v1267_v8, %v1235_v37  ;;  %v1367_v55 = vpack.c.bf16 %v1269_v47, %v1237_v7 }
  0xeb   :  { %v1366_v56 = vpack.c.bf16 %v1268_v20, %v1236_v48  ;;  %v1368_v40 = vpack.c.bf16 %v1270_v24, %v1238_v49  ;;  %v431_v59 = vpop.f32.mrb[4].mxu0  ;;  %v484_v4 = vpop.f32.mrb[4].mxu1 }
  0xec   :  { %v432_v10 = vadd.f32 %v431_v59, %v2804_v58  ;;  %v485_v63 = vadd.f32 %v484_v4, %v2804_v58  ;;  %v433_v62 = vpop.f32.mrb[5].mxu0  ;;  %v486_v2 = vpop.f32.mrb[5].mxu1 }
  0xed   :  { %v434_v11 = vadd.f32 %v433_v62, %v2804_v58  ;;  %v487_v57 = vadd.f32 %v486_v2, %v2804_v58  ;;  %v435_v61 = vpop.f32.mrb[6].mxu0  ;;  %v488_v21 = vpop.f32.mrb[6].mxu1  ;;  %1450 = vmatprep.subr.bf16.mxu0 %v1366_v56  ;;  %1493 = vmatprep.subr.bf16.mxu1 %v1368_v40 }
  0xee   :  { %v436_v34 = vadd.f32 %v435_v61, %v2814_v9  ;;  %v489_v1 = vadd.f32 %v488_v21, %v2814_v9  ;;  %v437_v6 = vpop.f32.mrb[7].mxu0  ;;  %v490_v35 = vpop.f32.mrb[7].mxu1  ;;  %1451 = vmatpush1.bf16.msra.mxu0 %v1365_v50  ;;  %1494 = vmatpush1.bf16.msra.mxu1 %v1367_v55  ;;  %v1299_v7 = vmax.f32 %v432_v10, 0.0  ;;  %v1301_v8 = vmax.f32 %v485_v63, 0.0 }
  0xef   :  { %v438_v36 = vadd.f32 %v437_v6, %v2814_v9  ;;  %v491_v37 = vadd.f32 %v490_v35, %v2814_v9  ;;  %v1300_v49 = vmax.f32 %v434_v11, 0.0  ;;  %v1302_v20 = vmax.f32 %v487_v57, 0.0 }
  0xf0   :  { %v1331_v47 = vmax.f32 %v436_v34, 0.0  ;;  %v1333_v48 = vmax.f32 %v489_v1, 0.0  ;;  %v2831_v34 = vld [vmem:[%s3315_s3] sm:$0x3f]  }
  0xf1   :  { %v1332_v24 = vmax.f32 %v438_v36, 0.0  ;;  %v1334_v56 = vmax.f32 %v491_v37, 0.0 }
  0xf2   :  { %v1397_v40 = vpack.c.bf16 %v1331_v47, %v1299_v7  ;;  %v1399_v59 = vpack.c.bf16 %v1333_v48, %v1301_v8 }
  0xf3   :  { %v1398_v4 = vpack.c.bf16 %v1332_v24, %v1300_v49  ;;  %v1400_v62 = vpack.c.bf16 %v1334_v56, %v1302_v20  ;;  %v527_v2 = vpop.f32.mrb[8].mxu0  ;;  %v580_v61 = vpop.f32.mrb[8].mxu1 }
  0xf4   :  { %v528_v50 = vadd.f32 %v527_v2, %v2800_v32  ;;  %v581_v55 = vadd.f32 %v580_v61, %v2800_v32  ;;  %v529_v21 = vpop.f32.mrb[9].mxu0  ;;  %v582_v6 = vpop.f32.mrb[9].mxu1 }
  0xf5   :  { %v530_v10 = vadd.f32 %v529_v21, %v2800_v32  ;;  %v583_v63 = vadd.f32 %v582_v6, %v2800_v32  ;;  %v531_v11 = vpop.f32.mrb[10].mxu0  ;;  %v584_v57 = vpop.f32.mrb[10].mxu1  ;;  %1452 = vmatprep.subr.bf16.mxu0 %v1398_v4  ;;  %1495 = vmatprep.subr.bf16.mxu1 %v1400_v62 }
  0xf6   :  { %v532_v1 = vadd.f32 %v531_v11, %v2802_v33  ;;  %v585_v35 = vadd.f32 %v584_v57, %v2802_v33  ;;  %v533_v36 = vpop.f32.mrb[11].mxu0  ;;  %v586_v37 = vpop.f32.mrb[11].mxu1  ;;  %1453 = vmatpush1.bf16.msra.mxu0 %v1397_v40  ;;  %1496 = vmatpush1.bf16.msra.mxu1 %v1399_v59  ;;  %v1239_v47 = vmax.f32 %v528_v50, 0.0  ;;  %v1241_v48 = vmax.f32 %v581_v55, 0.0 }
  0xf7   :  { %v534_v7 = vadd.f32 %v533_v36, %v2802_v33  ;;  %v587_v8 = vadd.f32 %v586_v37, %v2802_v33  ;;  %v1240_v24 = vmax.f32 %v530_v10, 0.0  ;;  %v1242_v56 = vmax.f32 %v583_v63, 0.0 }
  0xf8   :  { %v1271_v49 = vmax.f32 %v532_v1, 0.0  ;;  %v1273_v20 = vmax.f32 %v585_v35, 0.0 }
  0xf9   :  { %v1272_v4 = vmax.f32 %v534_v7, 0.0  ;;  %v1274_v62 = vmax.f32 %v587_v8, 0.0  ;;  %2321 = vmatmul.mubr.msk.bf16.vlgmr.msra.gmra.mrb[64].mxu0 %vm1446_vm2, %v2831_v34  ;;  %2322 = vmatmul.mubr.msk.bf16.vlgmr.msra.gmra.mrb[64].mxu1 %vm1446_vm2, %v2831_v34 }
  0xfa   :  { %v1369_v40 = vpack.c.bf16 %v1271_v49, %v1239_v47  ;;  %v1371_v59 = vpack.c.bf16 %v1273_v20, %v1241_v48  ;;  %1568 = vmatprep.mubr.bf16.mxu0 %v2343_v3  ;;  %1611 = vmatprep.mubr.bf16.mxu1 %v2343_v3 }
  0xfb   :  { %v1370_v2 = vpack.c.bf16 %v1272_v4, %v1240_v24  ;;  %v1372_v61 = vpack.c.bf16 %v1274_v62, %v1242_v56  ;;  %v537_v50 = vpop.f32.mrb[12].mxu0  ;;  %v590_v55 = vpop.f32.mrb[12].mxu1 }
  0xfc   :  { %v538_v21 = vadd.f32 %v537_v50, %v2804_v58  ;;  %v591_v6 = vadd.f32 %v590_v55, %v2804_v58  ;;  %v539_v10 = vpop.f32.mrb[13].mxu0  ;;  %v592_v63 = vpop.f32.mrb[13].mxu1 }
  0xfd   :  { %v540_v11 = vadd.f32 %v539_v10, %v2804_v58  ;;  %v593_v57 = vadd.f32 %v592_v63, %v2804_v58  ;;  %v541_v1 = vpop.f32.mrb[14].mxu0  ;;  %v594_v35 = vpop.f32.mrb[14].mxu1  ;;  %1536 = vmatprep.subr.bf16.mxu0 %v1370_v2  ;;  %1579 = vmatprep.subr.bf16.mxu1 %v1372_v61 }
  0xfe   :  { %v542_v36 = vadd.f32 %v541_v1, %v2814_v9  ;;  %v595_v37 = vadd.f32 %v594_v35, %v2814_v9  ;;  %v543_v7 = vpop.f32.mrb[15].mxu0  ;;  %v596_v8 = vpop.f32.mrb[15].mxu1  ;;  %1537 = vmatpush1.bf16.msra.mxu0 %v1369_v40  ;;  %1580 = vmatpush1.bf16.msra.mxu1 %v1371_v59  ;;  %v1303_v49 = vmax.f32 %v538_v21, 0.0  ;;  %v1305_v20 = vmax.f32 %v591_v6, 0.0 }
  0xff   :  { %v544_v47 = vadd.f32 %v543_v7, %v2814_v9  ;;  %v597_v48 = vadd.f32 %v596_v8, %v2814_v9  ;;  %v1304_v4 = vmax.f32 %v540_v11, 0.0  ;;  %v1306_v62 = vmax.f32 %v593_v57, 0.0 }
 0x100   :  { %v1335_v24 = vmax.f32 %v542_v36, 0.0  ;;  %v1337_v56 = vmax.f32 %v595_v37, 0.0 }
 0x101   :  { %v1336_v2 = vmax.f32 %v544_v47, 0.0  ;;  %v1338_v61 = vmax.f32 %v597_v48, 0.0 }
 0x102   :  { %v1401_v50 = vpack.c.bf16 %v1335_v24, %v1303_v49  ;;  %v1403_v55 = vpack.c.bf16 %v1337_v56, %v1305_v20 }
 0x103   :  { %v1402_v10 = vpack.c.bf16 %v1336_v2, %v1304_v4  ;;  %v1404_v63 = vpack.c.bf16 %v1338_v61, %v1306_v62  ;;  %v633_v1 = vpop.f32.mrb[16].mxu0  ;;  %v686_v35 = vpop.f32.mrb[16].mxu1 }
 0x104   :  { %v634_v40 = vadd.f32 %v633_v1, %v2800_v32  ;;  %v687_v59 = vadd.f32 %v686_v35, %v2800_v32  ;;  %v635_v7 = vpop.f32.mrb[17].mxu0  ;;  %v688_v8 = vpop.f32.mrb[17].mxu1 }
 0x105   :  { %v636_v21 = vadd.f32 %v635_v7, %v2800_v32  ;;  %v689_v6 = vadd.f32 %v688_v8, %v2800_v32  ;;  %v637_v11 = vpop.f32.mrb[18].mxu0  ;;  %v690_v57 = vpop.f32.mrb[18].mxu1  ;;  %1538 = vmatprep.subr.bf16.mxu0 %v1402_v10  ;;  %1581 = vmatprep.subr.bf16.mxu1 %v1404_v63 }
 0x106   :  { %v638_v36 = vadd.f32 %v637_v11, %v2802_v33  ;;  %v691_v37 = vadd.f32 %v690_v57, %v2802_v33  ;;  %v639_v47 = vpop.f32.mrb[19].mxu0  ;;  %v692_v48 = vpop.f32.mrb[19].mxu1  ;;  %1539 = vmatpush1.bf16.msra.mxu0 %v1401_v50  ;;  %1582 = vmatpush1.bf16.msra.mxu1 %v1403_v55  ;;  %v1243_v24 = vmax.f32 %v634_v40, 0.0  ;;  %v1245_v56 = vmax.f32 %v687_v59, 0.0 }
 0x107   :  { %v640_v49 = vadd.f32 %v639_v47, %v2802_v33  ;;  %v693_v20 = vadd.f32 %v692_v48, %v2802_v33  ;;  %v1244_v2 = vmax.f32 %v636_v21, 0.0  ;;  %v1246_v61 = vmax.f32 %v689_v6, 0.0 }
 0x108   :  { %v1275_v4 = vmax.f32 %v638_v36, 0.0  ;;  %v1277_v62 = vmax.f32 %v691_v37, 0.0 }
 0x109   :  { %v1276_v10 = vmax.f32 %v640_v49, 0.0  ;;  %v1278_v63 = vmax.f32 %v693_v20, 0.0  ;;  %2323 = vmatmul.mubr.msk.bf16.vlgmr.msra.gmra.mrb[68].mxu0 %vm1446_vm2, %v2831_v34  ;;  %2324 = vmatmul.mubr.msk.bf16.vlgmr.msra.gmra.mrb[68].mxu1 %vm1446_vm2, %v2831_v34 }
 0x10a   :  { %v1373_v50 = vpack.c.bf16 %v1275_v4, %v1243_v24  ;;  %v1375_v55 = vpack.c.bf16 %v1277_v62, %v1245_v56  ;;  %1654 = vmatprep.mubr.bf16.mxu0 %v2343_v3  ;;  %1697 = vmatprep.mubr.bf16.mxu1 %v2343_v3 }
 0x10b   :  { %v1374_v1 = vpack.c.bf16 %v1276_v10, %v1244_v2  ;;  %v1376_v35 = vpack.c.bf16 %v1278_v63, %v1246_v61  ;;  %v643_v40 = vpop.f32.mrb[20].mxu0  ;;  %v696_v59 = vpop.f32.mrb[20].mxu1 }
 0x10c   :  { %v644_v7 = vadd.f32 %v643_v40, %v2804_v58  ;;  %v697_v8 = vadd.f32 %v696_v59, %v2804_v58  ;;  %v645_v21 = vpop.f32.mrb[21].mxu0  ;;  %v698_v6 = vpop.f32.mrb[21].mxu1 }
 0x10d   :  { %v646_v11 = vadd.f32 %v645_v21, %v2804_v58  ;;  %v699_v57 = vadd.f32 %v698_v6, %v2804_v58  ;;  %v647_v36 = vpop.f32.mrb[22].mxu0  ;;  %v700_v37 = vpop.f32.mrb[22].mxu1  ;;  %1622 = vmatprep.subr.bf16.mxu0 %v1374_v1  ;;  %1665 = vmatprep.subr.bf16.mxu1 %v1376_v35 }
 0x10e   :  { %v648_v47 = vadd.f32 %v647_v36, %v2814_v9  ;;  %v701_v48 = vadd.f32 %v700_v37, %v2814_v9  ;;  %v649_v49 = vpop.f32.mrb[23].mxu0  ;;  %v702_v20 = vpop.f32.mrb[23].mxu1  ;;  %1623 = vmatpush1.bf16.msra.mxu0 %v1373_v50  ;;  %1666 = vmatpush1.bf16.msra.mxu1 %v1375_v55  ;;  %v1307_v4 = vmax.f32 %v644_v7, 0.0  ;;  %v1309_v62 = vmax.f32 %v697_v8, 0.0 }
 0x10f   :  { %v650_v24 = vadd.f32 %v649_v49, %v2814_v9  ;;  %v703_v56 = vadd.f32 %v702_v20, %v2814_v9  ;;  %v1308_v10 = vmax.f32 %v646_v11, 0.0  ;;  %v1310_v63 = vmax.f32 %v699_v57, 0.0 }
 0x110   :  { %v1339_v2 = vmax.f32 %v648_v47, 0.0  ;;  %v1341_v61 = vmax.f32 %v701_v48, 0.0 }
 0x111   :  { %v1340_v1 = vmax.f32 %v650_v24, 0.0  ;;  %v1342_v35 = vmax.f32 %v703_v56, 0.0 }
 0x112   :  { %v1405_v40 = vpack.c.bf16 %v1339_v2, %v1307_v4  ;;  %v1407_v59 = vpack.c.bf16 %v1341_v61, %v1309_v62 }
 0x113   :  { %v1406_v21 = vpack.c.bf16 %v1340_v1, %v1308_v10  ;;  %v1408_v6 = vpack.c.bf16 %v1342_v35, %v1310_v63  ;;  %v739_v36 = vpop.f32.mrb[24].mxu0  ;;  %v792_v37 = vpop.f32.mrb[24].mxu1 }
 0x114   :  { %v740_v50 = vadd.f32 %v739_v36, %v2800_v32  ;;  %v793_v55 = vadd.f32 %v792_v37, %v2800_v32  ;;  %v741_v49 = vpop.f32.mrb[25].mxu0  ;;  %v794_v20 = vpop.f32.mrb[25].mxu1 }
 0x115   :  { %v742_v7 = vadd.f32 %v741_v49, %v2800_v32  ;;  %v795_v8 = vadd.f32 %v794_v20, %v2800_v32  ;;  %v743_v11 = vpop.f32.mrb[26].mxu0  ;;  %v796_v57 = vpop.f32.mrb[26].mxu1  ;;  %1624 = vmatprep.subr.bf16.mxu0 %v1406_v21  ;;  %1667 = vmatprep.subr.bf16.mxu1 %v1408_v6 }
 0x116   :  { %v744_v47 = vadd.f32 %v743_v11, %v2802_v33  ;;  %v797_v48 = vadd.f32 %v796_v57, %v2802_v33  ;;  %v745_v24 = vpop.f32.mrb[27].mxu0  ;;  %v798_v56 = vpop.f32.mrb[27].mxu1  ;;  %1625 = vmatpush1.bf16.msra.mxu0 %v1405_v40  ;;  %1668 = vmatpush1.bf16.msra.mxu1 %v1407_v59  ;;  %v1247_v2 = vmax.f32 %v740_v50, 0.0  ;;  %v1249_v61 = vmax.f32 %v793_v55, 0.0 }
 0x117   :  { %v746_v4 = vadd.f32 %v745_v24, %v2802_v33  ;;  %v799_v62 = vadd.f32 %v798_v56, %v2802_v33  ;;  %v1248_v1 = vmax.f32 %v742_v7, 0.0  ;;  %v1250_v35 = vmax.f32 %v795_v8, 0.0 }
 0x118   :  { %v1279_v10 = vmax.f32 %v744_v47, 0.0  ;;  %v1281_v63 = vmax.f32 %v797_v48, 0.0 }
 0x119   :  { %v1280_v21 = vmax.f32 %v746_v4, 0.0  ;;  %v1282_v6 = vmax.f32 %v799_v62, 0.0  ;;  %2325 = vmatmul.mubr.msk.bf16.vlgmr.msra.gmra.mrb[72].mxu0 %vm1446_vm2, %v2831_v34  ;;  %2326 = vmatmul.mubr.msk.bf16.vlgmr.msra.gmra.mrb[72].mxu1 %vm1446_vm2, %v2831_v34 }
 0x11a   :  { %v1377_v40 = vpack.c.bf16 %v1279_v10, %v1247_v2  ;;  %v1379_v59 = vpack.c.bf16 %v1281_v63, %v1249_v61  ;;  %1740 = vmatprep.mubr.bf16.mxu0 %v2343_v3  ;;  %1783 = vmatprep.mubr.bf16.mxu1 %v2343_v3 }
 0x11b   :  { %v1378_v36 = vpack.c.bf16 %v1280_v21, %v1248_v1  ;;  %v1380_v37 = vpack.c.bf16 %v1282_v6, %v1250_v35  ;;  %v749_v50 = vpop.f32.mrb[28].mxu0  ;;  %v802_v55 = vpop.f32.mrb[28].mxu1 }
 0x11c   :  { %v750_v49 = vadd.f32 %v749_v50, %v2804_v58  ;;  %v803_v20 = vadd.f32 %v802_v55, %v2804_v58  ;;  %v751_v7 = vpop.f32.mrb[29].mxu0  ;;  %v804_v8 = vpop.f32.mrb[29].mxu1 }
 0x11d   :  { %v752_v11 = vadd.f32 %v751_v7, %v2804_v58  ;;  %v805_v57 = vadd.f32 %v804_v8, %v2804_v58  ;;  %v753_v47 = vpop.f32.mrb[30].mxu0  ;;  %v806_v48 = vpop.f32.mrb[30].mxu1  ;;  %1708 = vmatprep.subr.bf16.mxu0 %v1378_v36  ;;  %1751 = vmatprep.subr.bf16.mxu1 %v1380_v37 }
 0x11e   :  { %v754_v24 = vadd.f32 %v753_v47, %v2814_v9  ;;  %v807_v56 = vadd.f32 %v806_v48, %v2814_v9  ;;  %v755_v4 = vpop.f32.mrb[31].mxu0  ;;  %v808_v62 = vpop.f32.mrb[31].mxu1  ;;  %1709 = vmatpush1.bf16.msra.mxu0 %v1377_v40  ;;  %1752 = vmatpush1.bf16.msra.mxu1 %v1379_v59  ;;  %v1311_v10 = vmax.f32 %v750_v49, 0.0  ;;  %v1313_v63 = vmax.f32 %v803_v20, 0.0 }
 0x11f   :  { %v756_v2 = vadd.f32 %v755_v4, %v2814_v9  ;;  %v809_v61 = vadd.f32 %v808_v62, %v2814_v9  ;;  %v1312_v21 = vmax.f32 %v752_v11, 0.0  ;;  %v1314_v6 = vmax.f32 %v805_v57, 0.0 }
 0x120   :  { %v1343_v1 = vmax.f32 %v754_v24, 0.0  ;;  %v1345_v35 = vmax.f32 %v807_v56, 0.0 }
 0x121   :  { %v1344_v36 = vmax.f32 %v756_v2, 0.0  ;;  %v1346_v37 = vmax.f32 %v809_v61, 0.0 }
 0x122   :  { %v1409_v50 = vpack.c.bf16 %v1343_v1, %v1311_v10  ;;  %v1411_v55 = vpack.c.bf16 %v1345_v35, %v1313_v63 }
 0x123   :  { %v1410_v7 = vpack.c.bf16 %v1344_v36, %v1312_v21  ;;  %v1412_v8 = vpack.c.bf16 %v1346_v37, %v1314_v6  ;;  %v845_v47 = vpop.f32.mrb[32].mxu0  ;;  %v898_v48 = vpop.f32.mrb[32].mxu1 }
 0x124   :  { %v846_v40 = vadd.f32 %v845_v47, %v2800_v32  ;;  %v899_v59 = vadd.f32 %v898_v48, %v2800_v32  ;;  %v847_v4 = vpop.f32.mrb[33].mxu0  ;;  %v900_v62 = vpop.f32.mrb[33].mxu1 }
 0x125   :  { %v848_v49 = vadd.f32 %v847_v4, %v2800_v32  ;;  %v901_v20 = vadd.f32 %v900_v62, %v2800_v32  ;;  %v849_v11 = vpop.f32.mrb[34].mxu0  ;;  %v902_v57 = vpop.f32.mrb[34].mxu1  ;;  %1710 = vmatprep.subr.bf16.mxu0 %v1410_v7  ;;  %1753 = vmatprep.subr.bf16.mxu1 %v1412_v8 }
 0x126   :  { %v850_v24 = vadd.f32 %v849_v11, %v2802_v33  ;;  %v903_v56 = vadd.f32 %v902_v57, %v2802_v33  ;;  %v851_v2 = vpop.f32.mrb[35].mxu0  ;;  %v904_v61 = vpop.f32.mrb[35].mxu1  ;;  %1711 = vmatpush1.bf16.msra.mxu0 %v1409_v50  ;;  %1754 = vmatpush1.bf16.msra.mxu1 %v1411_v55  ;;  %v1251_v1 = vmax.f32 %v846_v40, 0.0  ;;  %v1253_v35 = vmax.f32 %v899_v59, 0.0 }
 0x127   :  { %v852_v10 = vadd.f32 %v851_v2, %v2802_v33  ;;  %v905_v63 = vadd.f32 %v904_v61, %v2802_v33  ;;  %v1252_v36 = vmax.f32 %v848_v49, 0.0  ;;  %v1254_v37 = vmax.f32 %v901_v20, 0.0 }
 0x128   :  { %v1283_v21 = vmax.f32 %v850_v24, 0.0  ;;  %v1285_v6 = vmax.f32 %v903_v56, 0.0 }
 0x129   :  { %v1284_v7 = vmax.f32 %v852_v10, 0.0  ;;  %v1286_v8 = vmax.f32 %v905_v63, 0.0  ;;  %2327 = vmatmul.mubr.msk.bf16.vlgmr.msra.gmra.mrb[76].mxu0 %vm1446_vm2, %v2831_v34  ;;  %2328 = vmatmul.mubr.msk.bf16.vlgmr.msra.gmra.mrb[76].mxu1 %vm1446_vm2, %v2831_v34 }
 0x12a   :  { %v1381_v50 = vpack.c.bf16 %v1283_v21, %v1251_v1  ;;  %v1383_v55 = vpack.c.bf16 %v1285_v6, %v1253_v35  ;;  %1826 = vmatprep.mubr.bf16.mxu0 %v2343_v3  ;;  %1869 = vmatprep.mubr.bf16.mxu1 %v2343_v3 }
 0x12b   :  { %v1382_v47 = vpack.c.bf16 %v1284_v7, %v1252_v36  ;;  %v1384_v48 = vpack.c.bf16 %v1286_v8, %v1254_v37  ;;  %v855_v40 = vpop.f32.mrb[36].mxu0  ;;  %v908_v59 = vpop.f32.mrb[36].mxu1 }
 0x12c   :  { %v856_v4 = vadd.f32 %v855_v40, %v2804_v58  ;;  %v909_v62 = vadd.f32 %v908_v59, %v2804_v58  ;;  %v857_v49 = vpop.f32.mrb[37].mxu0  ;;  %v910_v20 = vpop.f32.mrb[37].mxu1 }
 0x12d   :  { %v858_v11 = vadd.f32 %v857_v49, %v2804_v58  ;;  %v911_v57 = vadd.f32 %v910_v20, %v2804_v58  ;;  %v859_v24 = vpop.f32.mrb[38].mxu0  ;;  %v912_v56 = vpop.f32.mrb[38].mxu1  ;;  %1794 = vmatprep.subr.bf16.mxu0 %v1382_v47  ;;  %1837 = vmatprep.subr.bf16.mxu1 %v1384_v48 }
 0x12e   :  { %v860_v2 = vadd.f32 %v859_v24, %v2814_v9  ;;  %v913_v61 = vadd.f32 %v912_v56, %v2814_v9  ;;  %v861_v10 = vpop.f32.mrb[39].mxu0  ;;  %v914_v63 = vpop.f32.mrb[39].mxu1  ;;  %1795 = vmatpush1.bf16.msra.mxu0 %v1381_v50  ;;  %1838 = vmatpush1.bf16.msra.mxu1 %v1383_v55  ;;  %v1315_v21 = vmax.f32 %v856_v4, 0.0  ;;  %v1317_v6 = vmax.f32 %v909_v62, 0.0 }
 0x12f   :  { %v862_v1 = vadd.f32 %v861_v10, %v2814_v9  ;;  %v915_v35 = vadd.f32 %v914_v63, %v2814_v9  ;;  %v1316_v7 = vmax.f32 %v858_v11, 0.0  ;;  %v1318_v8 = vmax.f32 %v911_v57, 0.0 }
 0x130   :  { %v1347_v36 = vmax.f32 %v860_v2, 0.0  ;;  %v1349_v37 = vmax.f32 %v913_v61, 0.0 }
 0x131   :  { %v1348_v47 = vmax.f32 %v862_v1, 0.0  ;;  %v1350_v48 = vmax.f32 %v915_v35, 0.0 }
 0x132   :  { %v1413_v40 = vpack.c.bf16 %v1347_v36, %v1315_v21  ;;  %v1415_v59 = vpack.c.bf16 %v1349_v37, %v1317_v6 }
 0x133   :  { %v1414_v49 = vpack.c.bf16 %v1348_v47, %v1316_v7  ;;  %v1416_v20 = vpack.c.bf16 %v1350_v48, %v1318_v8  ;;  %v951_v24 = vpop.f32.mrb[40].mxu0  ;;  %v1004_v56 = vpop.f32.mrb[40].mxu1 }
 0x134   :  { %v952_v50 = vadd.f32 %v951_v24, %v2800_v32  ;;  %v1005_v55 = vadd.f32 %v1004_v56, %v2800_v32  ;;  %v953_v10 = vpop.f32.mrb[41].mxu0  ;;  %v1006_v63 = vpop.f32.mrb[41].mxu1 }
 0x135   :  { %v954_v4 = vadd.f32 %v953_v10, %v2800_v32  ;;  %v1007_v62 = vadd.f32 %v1006_v63, %v2800_v32  ;;  %v955_v11 = vpop.f32.mrb[42].mxu0  ;;  %v1008_v57 = vpop.f32.mrb[42].mxu1  ;;  %1796 = vmatprep.subr.bf16.mxu0 %v1414_v49  ;;  %1839 = vmatprep.subr.bf16.mxu1 %v1416_v20 }
 0x136   :  { %v956_v2 = vadd.f32 %v955_v11, %v2802_v33  ;;  %v1009_v61 = vadd.f32 %v1008_v57, %v2802_v33  ;;  %v957_v1 = vpop.f32.mrb[43].mxu0  ;;  %v1010_v35 = vpop.f32.mrb[43].mxu1  ;;  %1797 = vmatpush1.bf16.msra.mxu0 %v1413_v40  ;;  %1840 = vmatpush1.bf16.msra.mxu1 %v1415_v59  ;;  %v1255_v36 = vmax.f32 %v952_v50, 0.0  ;;  %v1257_v37 = vmax.f32 %v1005_v55, 0.0 }
 0x137   :  { %v958_v21 = vadd.f32 %v957_v1, %v2802_v33  ;;  %v1011_v6 = vadd.f32 %v1010_v35, %v2802_v33  ;;  %v1256_v47 = vmax.f32 %v954_v4, 0.0  ;;  %v1258_v48 = vmax.f32 %v1007_v62, 0.0 }
 0x138   :  { %v1287_v7 = vmax.f32 %v956_v2, 0.0  ;;  %v1289_v8 = vmax.f32 %v1009_v61, 0.0 }
 0x139   :  { %v1288_v49 = vmax.f32 %v958_v21, 0.0  ;;  %v1290_v20 = vmax.f32 %v1011_v6, 0.0  ;;  %2329 = vmatmul.mubr.msk.bf16.vlgmr.msra.gmra.mrb[80].mxu0 %vm1446_vm2, %v2831_v34  ;;  %2330 = vmatmul.mubr.msk.bf16.vlgmr.msra.gmra.mrb[80].mxu1 %vm1446_vm2, %v2831_v34 }
 0x13a   :  { %v1385_v40 = vpack.c.bf16 %v1287_v7, %v1255_v36  ;;  %v1387_v59 = vpack.c.bf16 %v1289_v8, %v1257_v37  ;;  %1912 = vmatprep.mubr.bf16.mxu0 %v2343_v3  ;;  %1955 = vmatprep.mubr.bf16.mxu1 %v2343_v3 }
 0x13b   :  { %v1386_v24 = vpack.c.bf16 %v1288_v49, %v1256_v47  ;;  %v1388_v56 = vpack.c.bf16 %v1290_v20, %v1258_v48  ;;  %v961_v50 = vpop.f32.mrb[44].mxu0  ;;  %v1014_v55 = vpop.f32.mrb[44].mxu1 }
 0x13c   :  { %v962_v10 = vadd.f32 %v961_v50, %v2804_v58  ;;  %v1015_v63 = vadd.f32 %v1014_v55, %v2804_v58  ;;  %v963_v4 = vpop.f32.mrb[45].mxu0  ;;  %v1016_v62 = vpop.f32.mrb[45].mxu1 }
 0x13d   :  { %v964_v11 = vadd.f32 %v963_v4, %v2804_v58  ;;  %v1017_v57 = vadd.f32 %v1016_v62, %v2804_v58  ;;  %v965_v2 = vpop.f32.mrb[46].mxu0  ;;  %v1018_v61 = vpop.f32.mrb[46].mxu1  ;;  %1880 = vmatprep.subr.bf16.mxu0 %v1386_v24  ;;  %1923 = vmatprep.subr.bf16.mxu1 %v1388_v56 }
 0x13e   :  { %v966_v1 = vadd.f32 %v965_v2, %v2814_v9  ;;  %v1019_v35 = vadd.f32 %v1018_v61, %v2814_v9  ;;  %v967_v21 = vpop.f32.mrb[47].mxu0  ;;  %v1020_v6 = vpop.f32.mrb[47].mxu1  ;;  %1881 = vmatpush1.bf16.msra.mxu0 %v1385_v40  ;;  %1924 = vmatpush1.bf16.msra.mxu1 %v1387_v59  ;;  %v1319_v7 = vmax.f32 %v962_v10, 0.0  ;;  %v1321_v8 = vmax.f32 %v1015_v63, 0.0 }
 0x13f   :  { %v968_v36 = vadd.f32 %v967_v21, %v2814_v9  ;;  %v1021_v37 = vadd.f32 %v1020_v6, %v2814_v9  ;;  %v1320_v49 = vmax.f32 %v964_v11, 0.0  ;;  %v1322_v20 = vmax.f32 %v1017_v57, 0.0 }
 0x140   :  { %v1351_v47 = vmax.f32 %v966_v1, 0.0  ;;  %v1353_v48 = vmax.f32 %v1019_v35, 0.0 }
 0x141   :  { %v1352_v24 = vmax.f32 %v968_v36, 0.0  ;;  %v1354_v56 = vmax.f32 %v1021_v37, 0.0 }
 0x142   :  { %v1417_v50 = vpack.c.bf16 %v1351_v47, %v1319_v7  ;;  %v1419_v55 = vpack.c.bf16 %v1353_v48, %v1321_v8 }
 0x143   :  { %v1418_v4 = vpack.c.bf16 %v1352_v24, %v1320_v49  ;;  %v1420_v62 = vpack.c.bf16 %v1354_v56, %v1322_v20  ;;  %v1057_v2 = vpop.f32.mrb[48].mxu0  ;;  %v1110_v61 = vpop.f32.mrb[48].mxu1 }
 0x144   :  { %v1058_v40 = vadd.f32 %v1057_v2, %v2800_v32  ;;  %v1111_v59 = vadd.f32 %v1110_v61, %v2800_v32  ;;  %v1059_v21 = vpop.f32.mrb[49].mxu0  ;;  %v1112_v6 = vpop.f32.mrb[49].mxu1 }
 0x145   :  { %v1060_v10 = vadd.f32 %v1059_v21, %v2800_v32  ;;  %v1113_v63 = vadd.f32 %v1112_v6, %v2800_v32  ;;  %v1061_v11 = vpop.f32.mrb[50].mxu0  ;;  %v1114_v57 = vpop.f32.mrb[50].mxu1  ;;  %1882 = vmatprep.subr.bf16.mxu0 %v1418_v4  ;;  %1925 = vmatprep.subr.bf16.mxu1 %v1420_v62 }
 0x146   :  { %v1062_v1 = vadd.f32 %v1061_v11, %v2802_v33  ;;  %v1115_v35 = vadd.f32 %v1114_v57, %v2802_v33  ;;  %v1063_v36 = vpop.f32.mrb[51].mxu0  ;;  %v1116_v37 = vpop.f32.mrb[51].mxu1  ;;  %1883 = vmatpush1.bf16.msra.mxu0 %v1417_v50  ;;  %1926 = vmatpush1.bf16.msra.mxu1 %v1419_v55  ;;  %v1259_v47 = vmax.f32 %v1058_v40, 0.0  ;;  %v1261_v48 = vmax.f32 %v1111_v59, 0.0 }
 0x147   :  { %v1064_v7 = vadd.f32 %v1063_v36, %v2802_v33  ;;  %v1117_v8 = vadd.f32 %v1116_v37, %v2802_v33  ;;  %v1260_v24 = vmax.f32 %v1060_v10, 0.0  ;;  %v1262_v56 = vmax.f32 %v1113_v63, 0.0 }
 0x148   :  { %v1291_v49 = vmax.f32 %v1062_v1, 0.0  ;;  %v1293_v20 = vmax.f32 %v1115_v35, 0.0 }
 0x149   :  { %v1292_v4 = vmax.f32 %v1064_v7, 0.0  ;;  %v1294_v62 = vmax.f32 %v1117_v8, 0.0  ;;  %2331 = vmatmul.mubr.msk.bf16.vlgmr.msra.gmra.mrb[84].mxu0 %vm1446_vm2, %v2831_v34  ;;  %2332 = vmatmul.mubr.msk.bf16.vlgmr.msra.gmra.mrb[84].mxu1 %vm1446_vm2, %v2831_v34 }
 0x14a   :  { %v1389_v50 = vpack.c.bf16 %v1291_v49, %v1259_v47  ;;  %v1391_v55 = vpack.c.bf16 %v1293_v20, %v1261_v48  ;;  %1998 = vmatprep.mubr.bf16.mxu0 %v2343_v3  ;;  %2041 = vmatprep.mubr.bf16.mxu1 %v2343_v3 }
 0x14b   :  { %v1390_v2 = vpack.c.bf16 %v1292_v4, %v1260_v24  ;;  %v1392_v61 = vpack.c.bf16 %v1294_v62, %v1262_v56  ;;  %v1067_v40 = vpop.f32.mrb[52].mxu0  ;;  %v1120_v59 = vpop.f32.mrb[52].mxu1 }
 0x14c   :  { %v1068_v21 = vadd.f32 %v1067_v40, %v2804_v58  ;;  %v1121_v6 = vadd.f32 %v1120_v59, %v2804_v58  ;;  %v1069_v10 = vpop.f32.mrb[53].mxu0  ;;  %v1122_v63 = vpop.f32.mrb[53].mxu1 }
 0x14d   :  { %v1070_v11 = vadd.f32 %v1069_v10, %v2804_v58  ;;  %v1123_v57 = vadd.f32 %v1122_v63, %v2804_v58  ;;  %v1071_v1 = vpop.f32.mrb[54].mxu0  ;;  %v1124_v35 = vpop.f32.mrb[54].mxu1  ;;  %1966 = vmatprep.subr.bf16.mxu0 %v1390_v2  ;;  %2009 = vmatprep.subr.bf16.mxu1 %v1392_v61 }
 0x14e   :  { %v1072_v36 = vadd.f32 %v1071_v1, %v2814_v9  ;;  %v1125_v37 = vadd.f32 %v1124_v35, %v2814_v9  ;;  %v1073_v7 = vpop.f32.mrb[55].mxu0  ;;  %v1126_v8 = vpop.f32.mrb[55].mxu1  ;;  %1967 = vmatpush1.bf16.msra.mxu0 %v1389_v50  ;;  %2010 = vmatpush1.bf16.msra.mxu1 %v1391_v55  ;;  %v1323_v49 = vmax.f32 %v1068_v21, 0.0  ;;  %v1325_v20 = vmax.f32 %v1121_v6, 0.0 }
 0x14f   :  { %v1074_v47 = vadd.f32 %v1073_v7, %v2814_v9  ;;  %v1127_v48 = vadd.f32 %v1126_v8, %v2814_v9  ;;  %v1324_v4 = vmax.f32 %v1070_v11, 0.0  ;;  %v1326_v62 = vmax.f32 %v1123_v57, 0.0 }
 0x150   :  { %v1355_v24 = vmax.f32 %v1072_v36, 0.0  ;;  %v1357_v56 = vmax.f32 %v1125_v37, 0.0 }
 0x151   :  { %v1356_v2 = vmax.f32 %v1074_v47, 0.0  ;;  %v1358_v61 = vmax.f32 %v1127_v48, 0.0 }
 0x152   :  { %v1421_v40 = vpack.c.bf16 %v1355_v24, %v1323_v49  ;;  %v1423_v59 = vpack.c.bf16 %v1357_v56, %v1325_v20 }
 0x153   :  { %v1422_v10 = vpack.c.bf16 %v1356_v2, %v1324_v4  ;;  %v1424_v63 = vpack.c.bf16 %v1358_v61, %v1326_v62  ;;  %v1163_v1 = vpop.f32.mrb[56].mxu0  ;;  %v1216_v35 = vpop.f32.mrb[56].mxu1 }
 0x154   :  { %v1164_v50 = vadd.f32 %v1163_v1, %v2800_v32  ;;  %v1217_v55 = vadd.f32 %v1216_v35, %v2800_v32  ;;  %v1165_v7 = vpop.f32.mrb[57].mxu0  ;;  %v1218_v8 = vpop.f32.mrb[57].mxu1 }
 0x155   :  { %v1166_v21 = vadd.f32 %v1165_v7, %v2800_v32  ;;  %v1219_v6 = vadd.f32 %v1218_v8, %v2800_v32  ;;  %v1167_v11 = vpop.f32.mrb[58].mxu0  ;;  %v1220_v57 = vpop.f32.mrb[58].mxu1  ;;  %1968 = vmatprep.subr.bf16.mxu0 %v1422_v10  ;;  %2011 = vmatprep.subr.bf16.mxu1 %v1424_v63 }
 0x156   :  { %v1168_v36 = vadd.f32 %v1167_v11, %v2802_v33  ;;  %v1221_v37 = vadd.f32 %v1220_v57, %v2802_v33  ;;  %v1169_v47 = vpop.f32.mrb[59].mxu0  ;;  %v1222_v48 = vpop.f32.mrb[59].mxu1  ;;  %1969 = vmatpush1.bf16.msra.mxu0 %v1421_v40  ;;  %2012 = vmatpush1.bf16.msra.mxu1 %v1423_v59  ;;  %v1263_v24 = vmax.f32 %v1164_v50, 0.0  ;;  %v1265_v56 = vmax.f32 %v1217_v55, 0.0 }
 0x157   :  { %v1170_v49 = vadd.f32 %v1169_v47, %v2802_v33  ;;  %v1223_v20 = vadd.f32 %v1222_v48, %v2802_v33  ;;  %v1264_v62 = vmax.f32 %v1166_v21, 0.0  ;;  %v1266_v2 = vmax.f32 %v1219_v6, 0.0 }
 0x158   :  { %v1295_v4 = vmax.f32 %v1168_v36, 0.0  ;;  %v1297_v32 = vmax.f32 %v1221_v37, 0.0 }
 0x159   :  { %v1296_v61 = vmax.f32 %v1170_v49, 0.0  ;;  %v1298_v10 = vmax.f32 %v1223_v20, 0.0  ;;  %2333 = vmatmul.mubr.msk.bf16.vlgmr.msra.gmra.mrb[88].mxu0 %vm1446_vm2, %v2831_v34  ;;  %2334 = vmatmul.mubr.msk.bf16.vlgmr.msra.gmra.mrb[88].mxu1 %vm1446_vm2, %v2831_v34 }
 0x15a   :  { %v1393_v40 = vpack.c.bf16 %v1295_v4, %v1263_v24  ;;  %v1395_v59 = vpack.c.bf16 %v1297_v32, %v1265_v56  ;;  %2084 = vmatprep.mubr.bf16.mxu0 %v2343_v3  ;;  %2127 = vmatprep.mubr.bf16.mxu1 %v2343_v3 }
 0x15b   :  { %v1394_v33 = vpack.c.bf16 %v1296_v61, %v1264_v62  ;;  %v1396_v63 = vpack.c.bf16 %v1298_v10, %v1266_v2  ;;  %v1173_v1 = vpop.f32.mrb[60].mxu0  ;;  %v1226_v35 = vpop.f32.mrb[60].mxu1 }
 0x15c   :  { %v1174_v50 = vadd.f32 %v1173_v1, %v2804_v58  ;;  %v1227_v55 = vadd.f32 %v1226_v35, %v2804_v58  ;;  %v1175_v7 = vpop.f32.mrb[61].mxu0  ;;  %v1228_v8 = vpop.f32.mrb[61].mxu1 }
 0x15d   :  { %v1176_v21 = vadd.f32 %v1175_v7, %v2804_v58  ;;  %v1229_v6 = vadd.f32 %v1228_v8, %v2804_v58  ;;  %v1177_v11 = vpop.f32.mrb[62].mxu0  ;;  %v1230_v57 = vpop.f32.mrb[62].mxu1  ;;  %2052 = vmatprep.subr.bf16.mxu0 %v1394_v33  ;;  %2095 = vmatprep.subr.bf16.mxu1 %v1396_v63 }
 0x15e   :  { %v1178_v3 = vadd.f32 %v1177_v11, %v2814_v9  ;;  %v1231_v36 = vadd.f32 %v1230_v57, %v2814_v9  ;;  %v1179_v37 = vpop.f32.mrb[63].mxu0  ;;  %v1232_v47 = vpop.f32.mrb[63].mxu1  ;;  %2053 = vmatpush1.bf16.msra.mxu0 %v1393_v40  ;;  %2096 = vmatpush1.bf16.msra.mxu1 %v1395_v59  ;;  %v1327_v20 = vmax.f32 %v1174_v50, 0.0  ;;  %v1329_v24 = vmax.f32 %v1227_v55, 0.0 }
 0x15f   :  { %v1180_v48 = vadd.f32 %v1179_v37, %v2814_v9  ;;  %v1233_v49 = vadd.f32 %v1232_v47, %v2814_v9  ;;  %v1328_v4 = vmax.f32 %v1176_v21, 0.0  ;;  %v1330_v32 = vmax.f32 %v1229_v6, 0.0  ;;  %v2987_v9 = vpop.permute.xlu0 %1433  ;;  %v2989_v40 = vpop.permute.xlu1 %1438 }
 0x160   :  { %v1359_v56 = vmax.f32 %v1178_v3, 0.0  ;;  %v1361_v58 = vmax.f32 %v1231_v36, 0.0 }
 0x161   :  { %v1360_v62 = vmax.f32 %v1180_v48, 0.0  ;;  %v1362_v2 = vmax.f32 %v1233_v49, 0.0 }
 0x162   :  { %v1425_v61 = vpack.c.bf16 %v1359_v56, %v1327_v20  ;;  %v1427_v10 = vpack.c.bf16 %v1361_v58, %v1329_v24 }
 0x163   :  { %v1426_v33 = vpack.c.bf16 %v1360_v62, %v1328_v4  ;;  %v1428_v63 = vpack.c.bf16 %v1362_v2, %v1330_v32 }
 0x165   :  { %2054 = vmatprep.subr.bf16.mxu0 %v1426_v33  ;;  %2097 = vmatprep.subr.bf16.mxu1 %v1428_v63 }
 0x166   :  { %2055 = vmatpush1.bf16.msra.mxu0 %v1425_v61  ;;  %2098 = vmatpush1.bf16.msra.mxu1 %v1427_v10 }
 0x169   :  { %2335 = vmatmul.mubr.msk.bf16.vlgmr.msra.gmra.mrb[92].mxu0 %vm1446_vm2, %v2831_v34  ;;  %2336 = vmatmul.mubr.msk.bf16.vlgmr.msra.gmra.mrb[92].mxu1 %vm1446_vm2, %v2831_v34 }
 0x1cc   :  { %v1484_v59 = vpop.f32.mrb[64].mxu0  ;;  %v1527_v1 = vpop.f32.mrb[64].mxu1 }
 0x1cd   :  { %v1485_v35 = vadd.f32 %v1484_v59, %v2987_v9  ;;  %v1528_v50 = vadd.f32 %v1527_v1, %v2987_v9  ;;  %v1486_v55 = vpop.f32.mrb[65].mxu0  ;;  %v1529_v7 = vpop.f32.mrb[65].mxu1 }
 0x1ce   :  { %v1487_v8 = vadd.f32 %v1486_v55, %v2987_v9  ;;  %v1530_v21 = vadd.f32 %v1529_v7, %v2987_v9  ;;  %v1488_v6 = vpop.f32.mrb[66].mxu0  ;;  %v1531_v11 = vpop.f32.mrb[66].mxu1 }
 0x1cf   :  { %v2138_v34 = vadd.f32 %v1485_v35, %v2411_v14  ;;  %v2140_v57 = vadd.f32 %v1528_v50, %v2414_v15  ;;  %v1489_v3 = vadd.f32 %v1488_v6, %v2989_v40  ;;  %v1532_v36 = vadd.f32 %v1531_v11, %v2989_v40  ;;  %v1490_v37 = vpop.f32.mrb[67].mxu0  ;;  %v1533_v47 = vpop.f32.mrb[67].mxu1 }
 0x1d0   :  { %v2139_v48 = vadd.f32 %v1487_v8, %v2405_v12  ;;  %v2141_v49 = vadd.f32 %v1530_v21, %v2408_v13  ;;  %v1491_v20 = vadd.f32 %v1490_v37, %v2989_v40  ;;  %v1534_v24 = vadd.f32 %v1533_v47, %v2989_v40 }
 0x1d1   :  { %2202 = vst [vmem:[%s3316_s5] sm:$0xff] %v2138_v34  ;;  %2204 = vst [vmem:[%s3316_s5 + $0x10] sm:$0xff] %v2140_v57  ;;  %v2170_v56 = vadd.f32 %v1489_v3, %v2411_v14  ;;  %v2172_v58 = vadd.f32 %v1532_v36, %v2414_v15 }
 0x1d2   :  { %2203 = vst [vmem:[%s3316_s5 + $0x8] sm:$0xff] %v2139_v48  ;;  %2205 = vst [vmem:[%s3316_s5 + $0x18] sm:$0xff] %v2141_v49  ;;  %v2171_v4 = vadd.f32 %v1491_v20, %v2405_v12  ;;  %v2173_v32 = vadd.f32 %v1534_v24, %v2408_v13 }
 0x1d3   :  { %2234 = vst [vmem:[%s3316_s5 + $0x100] sm:$0xf] %v2170_v56  ;;  %2236 = vst [vmem:[%s3316_s5 + $0x110] sm:$0xf] %v2172_v58 }
 0x1d4   :  { %2235 = vst [vmem:[%s3316_s5 + $0x108] sm:$0xf] %v2171_v4  ;;  %2237 = vst [vmem:[%s3316_s5 + $0x118] sm:$0xf] %v2173_v32 }
 0x1dc   :  { %v1570_v14 = vpop.f32.mrb[68].mxu0  ;;  %v1613_v12 = vpop.f32.mrb[68].mxu1 }
 0x1dd   :  { %v1571_v13 = vadd.f32 %v1570_v14, %v2987_v9  ;;  %v1614_v15 = vadd.f32 %v1613_v12, %v2987_v9  ;;  %v1572_v62 = vpop.f32.mrb[69].mxu0  ;;  %v1615_v2 = vpop.f32.mrb[69].mxu1 }
 0x1de   :  { %v1573_v61 = vadd.f32 %v1572_v62, %v2987_v9  ;;  %v1616_v10 = vadd.f32 %v1615_v2, %v2987_v9  ;;  %v1574_v33 = vpop.f32.mrb[70].mxu0  ;;  %v1617_v63 = vpop.f32.mrb[70].mxu1 }
 0x1df   :  { %v2142_v59 = vadd.f32 %v1571_v13, %v2423_v18  ;;  %v2144_v1 = vadd.f32 %v1614_v15, %v2426_v19  ;;  %v1575_v35 = vadd.f32 %v1574_v33, %v2989_v40  ;;  %v1618_v50 = vadd.f32 %v1617_v63, %v2989_v40  ;;  %v1576_v55 = vpop.f32.mrb[71].mxu0  ;;  %v1619_v7 = vpop.f32.mrb[71].mxu1 }
 0x1e0   :  { %v2143_v8 = vadd.f32 %v1573_v61, %v2417_v16  ;;  %v2145_v21 = vadd.f32 %v1616_v10, %v2420_v17  ;;  %v1577_v6 = vadd.f32 %v1576_v55, %v2989_v40  ;;  %v1620_v11 = vadd.f32 %v1619_v7, %v2989_v40 }
 0x1e1   :  { %2206 = vst [vmem:[%s3316_s5 + $0x20] sm:$0xff] %v2142_v59  ;;  %2208 = vst [vmem:[%s3316_s5 + $0x30] sm:$0xff] %v2144_v1  ;;  %v2174_v34 = vadd.f32 %v1575_v35, %v2423_v18  ;;  %v2176_v57 = vadd.f32 %v1618_v50, %v2426_v19 }
 0x1e2   :  { %2207 = vst [vmem:[%s3316_s5 + $0x28] sm:$0xff] %v2143_v8  ;;  %2209 = vst [vmem:[%s3316_s5 + $0x38] sm:$0xff] %v2145_v21  ;;  %v2175_v3 = vadd.f32 %v1577_v6, %v2417_v16  ;;  %v2177_v36 = vadd.f32 %v1620_v11, %v2420_v17 }
 0x1e3   :  { %2238 = vst [vmem:[%s3316_s5 + $0x120] sm:$0xf] %v2174_v34  ;;  %2240 = vst [vmem:[%s3316_s5 + $0x130] sm:$0xf] %v2176_v57 }
 0x1e4   :  { %2239 = vst [vmem:[%s3316_s5 + $0x128] sm:$0xf] %v2175_v3  ;;  %2241 = vst [vmem:[%s3316_s5 + $0x138] sm:$0xf] %v2177_v36 }
 0x1ec   :  { %v1656_v18 = vpop.f32.mrb[72].mxu0  ;;  %v1699_v16 = vpop.f32.mrb[72].mxu1 }
 0x1ed   :  { %v1657_v17 = vadd.f32 %v1656_v18, %v2987_v9  ;;  %v1700_v19 = vadd.f32 %v1699_v16, %v2987_v9  ;;  %v1658_v37 = vpop.f32.mrb[73].mxu0  ;;  %v1701_v47 = vpop.f32.mrb[73].mxu1 }
 0x1ee   :  { %v1659_v48 = vadd.f32 %v1658_v37, %v2987_v9  ;;  %v1702_v49 = vadd.f32 %v1701_v47, %v2987_v9  ;;  %v1660_v20 = vpop.f32.mrb[74].mxu0  ;;  %v1703_v24 = vpop.f32.mrb[74].mxu1 }
 0x1ef   :  { %v2146_v56 = vadd.f32 %v1657_v17, %v2477_v52  ;;  %v2148_v58 = vadd.f32 %v1700_v19, %v2485_v54  ;;  %v1661_v4 = vadd.f32 %v1660_v20, %v2989_v40  ;;  %v1704_v32 = vadd.f32 %v1703_v24, %v2989_v40  ;;  %v1662_v14 = vpop.f32.mrb[75].mxu0  ;;  %v1705_v12 = vpop.f32.mrb[75].mxu1 }
 0x1f0   :  { %v2147_v13 = vadd.f32 %v1659_v48, %v2452_v41  ;;  %v2149_v15 = vadd.f32 %v1702_v49, %v2455_v42  ;;  %v1663_v62 = vadd.f32 %v1662_v14, %v2989_v40  ;;  %v1706_v2 = vadd.f32 %v1705_v12, %v2989_v40 }
 0x1f1   :  { %2210 = vst [vmem:[%s3316_s5 + $0x40] sm:$0xff] %v2146_v56  ;;  %2212 = vst [vmem:[%s3316_s5 + $0x50] sm:$0xff] %v2148_v58  ;;  %v2178_v61 = vadd.f32 %v1661_v4, %v2477_v52  ;;  %v2180_v10 = vadd.f32 %v1704_v32, %v2485_v54 }
 0x1f2   :  { %2211 = vst [vmem:[%s3316_s5 + $0x48] sm:$0xff] %v2147_v13  ;;  %2213 = vst [vmem:[%s3316_s5 + $0x58] sm:$0xff] %v2149_v15  ;;  %v2179_v33 = vadd.f32 %v1663_v62, %v2452_v41  ;;  %v2181_v63 = vadd.f32 %v1706_v2, %v2455_v42 }
 0x1f3   :  { %2242 = vst [vmem:[%s3316_s5 + $0x140] sm:$0xf] %v2178_v61  ;;  %2244 = vst [vmem:[%s3316_s5 + $0x150] sm:$0xf] %v2180_v10 }
 0x1f4   :  { %2243 = vst [vmem:[%s3316_s5 + $0x148] sm:$0xf] %v2179_v33  ;;  %2245 = vst [vmem:[%s3316_s5 + $0x158] sm:$0xf] %v2181_v63 }
 0x1fc   :  { %v1742_v52 = vpop.f32.mrb[76].mxu0  ;;  %v1785_v41 = vpop.f32.mrb[76].mxu1 }
 0x1fd   :  { %v1743_v42 = vadd.f32 %v1742_v52, %v2987_v9  ;;  %v1786_v54 = vadd.f32 %v1785_v41, %v2987_v9  ;;  %v1744_v59 = vpop.f32.mrb[77].mxu0  ;;  %v1787_v1 = vpop.f32.mrb[77].mxu1 }
 0x1fe   :  { %v1745_v35 = vadd.f32 %v1744_v59, %v2987_v9  ;;  %v1788_v50 = vadd.f32 %v1787_v1, %v2987_v9  ;;  %v1746_v55 = vpop.f32.mrb[78].mxu0  ;;  %v1789_v7 = vpop.f32.mrb[78].mxu1 }
 0x1ff   :  { %v2150_v8 = vadd.f32 %v1743_v42, %v2633_v45  ;;  %v2152_v21 = vadd.f32 %v1786_v54, %v2636_v46  ;;  %v1747_v6 = vadd.f32 %v1746_v55, %v2989_v40  ;;  %v1790_v11 = vadd.f32 %v1789_v7, %v2989_v40  ;;  %v1748_v34 = vpop.f32.mrb[79].mxu0  ;;  %v1791_v57 = vpop.f32.mrb[79].mxu1 }
 0x200   :  { %v2151_v3 = vadd.f32 %v1745_v35, %v2505_v60  ;;  %v2153_v36 = vadd.f32 %v1788_v50, %v2519_v0  ;;  %v1749_v18 = vadd.f32 %v1748_v34, %v2989_v40  ;;  %v1792_v16 = vadd.f32 %v1791_v57, %v2989_v40 }
 0x201   :  { %2214 = vst [vmem:[%s3316_s5 + $0x60] sm:$0xff] %v2150_v8  ;;  %2216 = vst [vmem:[%s3316_s5 + $0x70] sm:$0xff] %v2152_v21  ;;  %v2182_v17 = vadd.f32 %v1747_v6, %v2633_v45  ;;  %v2184_v19 = vadd.f32 %v1790_v11, %v2636_v46 }
 0x202   :  { %2215 = vst [vmem:[%s3316_s5 + $0x68] sm:$0xff] %v2151_v3  ;;  %2217 = vst [vmem:[%s3316_s5 + $0x78] sm:$0xff] %v2153_v36  ;;  %v2183_v37 = vadd.f32 %v1749_v18, %v2505_v60  ;;  %v2185_v47 = vadd.f32 %v1792_v16, %v2519_v0 }
 0x203   :  { %2246 = vst [vmem:[%s3316_s5 + $0x160] sm:$0xf] %v2182_v17  ;;  %2248 = vst [vmem:[%s3316_s5 + $0x170] sm:$0xf] %v2184_v19 }
 0x204   :  { %2247 = vst [vmem:[%s3316_s5 + $0x168] sm:$0xf] %v2183_v37  ;;  %2249 = vst [vmem:[%s3316_s5 + $0x178] sm:$0xf] %v2185_v47 }
 0x20c   :  { %v1828_v45 = vpop.f32.mrb[80].mxu0  ;;  %v1871_v60 = vpop.f32.mrb[80].mxu1 }
 0x20d   :  { %v1829_v0 = vadd.f32 %v1828_v45, %v2987_v9  ;;  %v1872_v46 = vadd.f32 %v1871_v60, %v2987_v9  ;;  %v1830_v48 = vpop.f32.mrb[81].mxu0  ;;  %v1873_v49 = vpop.f32.mrb[81].mxu1 }
 0x20e   :  { %v1831_v20 = vadd.f32 %v1830_v48, %v2987_v9  ;;  %v1874_v24 = vadd.f32 %v1873_v49, %v2987_v9  ;;  %v1832_v56 = vpop.f32.mrb[82].mxu0  ;;  %v1875_v58 = vpop.f32.mrb[82].mxu1 }
 0x20f   :  { %v2154_v4 = vadd.f32 %v1829_v0, %v2677_v25  ;;  %v2156_v32 = vadd.f32 %v1872_v46, %v2680_v29  ;;  %v1833_v14 = vadd.f32 %v1832_v56, %v2989_v40  ;;  %v1876_v12 = vadd.f32 %v1875_v58, %v2989_v40  ;;  %v1834_v13 = vpop.f32.mrb[83].mxu0  ;;  %v1877_v15 = vpop.f32.mrb[83].mxu1 }
 0x210   :  { %v2155_v62 = vadd.f32 %v1831_v20, %v2649_v51  ;;  %v2157_v2 = vadd.f32 %v1874_v24, %v2652_v53  ;;  %v1835_v61 = vadd.f32 %v1834_v13, %v2989_v40  ;;  %v1878_v10 = vadd.f32 %v1877_v15, %v2989_v40 }
 0x211   :  { %2218 = vst [vmem:[%s3316_s5 + $0x80] sm:$0xff] %v2154_v4  ;;  %2220 = vst [vmem:[%s3316_s5 + $0x90] sm:$0xff] %v2156_v32  ;;  %v2186_v33 = vadd.f32 %v1833_v14, %v2677_v25  ;;  %v2188_v63 = vadd.f32 %v1876_v12, %v2680_v29 }
 0x212   :  { %2219 = vst [vmem:[%s3316_s5 + $0x88] sm:$0xff] %v2155_v62  ;;  %2221 = vst [vmem:[%s3316_s5 + $0x98] sm:$0xff] %v2157_v2  ;;  %v2187_v52 = vadd.f32 %v1835_v61, %v2649_v51  ;;  %v2189_v41 = vadd.f32 %v1878_v10, %v2652_v53 }
 0x213   :  { %2250 = vst [vmem:[%s3316_s5 + $0x180] sm:$0xf] %v2186_v33  ;;  %2252 = vst [vmem:[%s3316_s5 + $0x190] sm:$0xf] %v2188_v63 }
 0x214   :  { %2251 = vst [vmem:[%s3316_s5 + $0x188] sm:$0xf] %v2187_v52  ;;  %2253 = vst [vmem:[%s3316_s5 + $0x198] sm:$0xf] %v2189_v41 }
 0x21c   :  { %v1914_v25 = vpop.f32.mrb[84].mxu0  ;;  %v1957_v51 = vpop.f32.mrb[84].mxu1 }
 0x21d   :  { %v1915_v53 = vadd.f32 %v1914_v25, %v2987_v9  ;;  %v1958_v29 = vadd.f32 %v1957_v51, %v2987_v9  ;;  %v1916_v42 = vpop.f32.mrb[85].mxu0  ;;  %v1959_v54 = vpop.f32.mrb[85].mxu1 }
 0x21e   :  { %v1917_v59 = vadd.f32 %v1916_v42, %v2987_v9  ;;  %v1960_v1 = vadd.f32 %v1959_v54, %v2987_v9  ;;  %v1918_v35 = vpop.f32.mrb[86].mxu0  ;;  %v1961_v50 = vpop.f32.mrb[86].mxu1 }
 0x21f   :  { %v2158_v55 = vadd.f32 %v1915_v53, %v2538_v5  ;;  %v2160_v7 = vadd.f32 %v1958_v29, %v2565_v22  ;;  %v1919_v8 = vadd.f32 %v1918_v35, %v2989_v40  ;;  %v1962_v21 = vadd.f32 %v1961_v50, %v2989_v40  ;;  %v1920_v6 = vpop.f32.mrb[87].mxu0  ;;  %v1963_v11 = vpop.f32.mrb[87].mxu1 }
 0x220   :  { %v2159_v34 = vadd.f32 %v1917_v59, %v2693_v38  ;;  %v2161_v57 = vadd.f32 %v1960_v1, %v2696_v39  ;;  %v1921_v3 = vadd.f32 %v1920_v6, %v2989_v40  ;;  %v1964_v36 = vadd.f32 %v1963_v11, %v2989_v40 }
 0x221   :  { %2222 = vst [vmem:[%s3316_s5 + $0xa0] sm:$0xff] %v2158_v55  ;;  %2224 = vst [vmem:[%s3316_s5 + $0xb0] sm:$0xff] %v2160_v7  ;;  %v2190_v18 = vadd.f32 %v1919_v8, %v2538_v5  ;;  %v2192_v16 = vadd.f32 %v1962_v21, %v2565_v22 }
 0x222   :  { %2223 = vst [vmem:[%s3316_s5 + $0xa8] sm:$0xff] %v2159_v34  ;;  %2225 = vst [vmem:[%s3316_s5 + $0xb8] sm:$0xff] %v2161_v57  ;;  %v2191_v17 = vadd.f32 %v1921_v3, %v2693_v38  ;;  %v2193_v19 = vadd.f32 %v1964_v36, %v2696_v39 }
 0x223   :  { %2254 = vst [vmem:[%s3316_s5 + $0x1a0] sm:$0xf] %v2190_v18  ;;  %2256 = vst [vmem:[%s3316_s5 + $0x1b0] sm:$0xf] %v2192_v16 }
 0x224   :  { %2255 = vst [vmem:[%s3316_s5 + $0x1a8] sm:$0xf] %v2191_v17  ;;  %2257 = vst [vmem:[%s3316_s5 + $0x1b8] sm:$0xf] %v2193_v19 }
 0x22c   :  { %v2000_v5 = vpop.f32.mrb[88].mxu0  ;;  %v2043_v22 = vpop.f32.mrb[88].mxu1 }
 0x22d   :  { %v2001_v38 = vadd.f32 %v2000_v5, %v2987_v9  ;;  %v2044_v39 = vadd.f32 %v2043_v22, %v2987_v9  ;;  %v2002_v37 = vpop.f32.mrb[89].mxu0  ;;  %v2045_v47 = vpop.f32.mrb[89].mxu1 }
 0x22e   :  { %v2003_v45 = vadd.f32 %v2002_v37, %v2987_v9  ;;  %v2046_v60 = vadd.f32 %v2045_v47, %v2987_v9  ;;  %v2004_v0 = vpop.f32.mrb[90].mxu0  ;;  %v2047_v46 = vpop.f32.mrb[90].mxu1 }
 0x22f   :  { %v2162_v48 = vadd.f32 %v2001_v38, %v2583_v27  ;;  %v2164_v49 = vadd.f32 %v2044_v39, %v2587_v28  ;;  %v2005_v20 = vadd.f32 %v2004_v0, %v2989_v40  ;;  %v2048_v24 = vadd.f32 %v2047_v46, %v2989_v40  ;;  %v2006_v56 = vpop.f32.mrb[91].mxu0  ;;  %v2049_v58 = vpop.f32.mrb[91].mxu1 }
 0x230   :  { %v2163_v4 = vadd.f32 %v2003_v45, %v2569_v23  ;;  %v2165_v32 = vadd.f32 %v2046_v60, %v2579_v26  ;;  %v2007_v14 = vadd.f32 %v2006_v56, %v2989_v40  ;;  %v2050_v12 = vadd.f32 %v2049_v58, %v2989_v40 }
 0x231   :  { %2226 = vst [vmem:[%s3316_s5 + $0xc0] sm:$0xff] %v2162_v48  ;;  %2228 = vst [vmem:[%s3316_s5 + $0xd0] sm:$0xff] %v2164_v49  ;;  %v2194_v13 = vadd.f32 %v2005_v20, %v2583_v27  ;;  %v2196_v15 = vadd.f32 %v2048_v24, %v2587_v28 }
 0x232   :  { %2227 = vst [vmem:[%s3316_s5 + $0xc8] sm:$0xff] %v2163_v4  ;;  %2229 = vst [vmem:[%s3316_s5 + $0xd8] sm:$0xff] %v2165_v32  ;;  %v2195_v62 = vadd.f32 %v2007_v14, %v2569_v23  ;;  %v2197_v2 = vadd.f32 %v2050_v12, %v2579_v26 }
 0x233   :  { %2258 = vst [vmem:[%s3316_s5 + $0x1c0] sm:$0xf] %v2194_v13  ;;  %2260 = vst [vmem:[%s3316_s5 + $0x1d0] sm:$0xf] %v2196_v15 }
 0x234   :  { %2259 = vst [vmem:[%s3316_s5 + $0x1c8] sm:$0xf] %v2195_v62  ;;  %2261 = vst [vmem:[%s3316_s5 + $0x1d8] sm:$0xf] %v2197_v2 }
 0x23c   :  { %v2086_v27 = vpop.f32.mrb[92].mxu0  ;;  %v2129_v23 = vpop.f32.mrb[92].mxu1 }
 0x23d   :  { %v2087_v26 = vadd.f32 %v2086_v27, %v2987_v9  ;;  %v2130_v28 = vadd.f32 %v2129_v23, %v2987_v9  ;;  %v2088_v61 = vpop.f32.mrb[93].mxu0  ;;  %v2131_v10 = vpop.f32.mrb[93].mxu1 }
 0x23e   :  { %v2089_v33 = vadd.f32 %v2088_v61, %v2987_v9  ;;  %v2132_v63 = vadd.f32 %v2131_v10, %v2987_v9  ;;  %v2090_v52 = vpop.f32.mrb[94].mxu0  ;;  %v2133_v41 = vpop.f32.mrb[94].mxu1 }
 0x23f   :  { %v2166_v25 = vadd.f32 %v2087_v26, %v2624_v43  ;;  %v2168_v51 = vadd.f32 %v2130_v28, %v2628_v44  ;;  %v2091_v53 = vadd.f32 %v2090_v52, %v2989_v40  ;;  %v2134_v29 = vadd.f32 %v2133_v41, %v2989_v40  ;;  %v2092_v42 = vpop.f32.mrb[95].mxu0  ;;  %v2135_v54 = vpop.f32.mrb[95].mxu1 }
 0x240   :  { %v2167_v59 = vadd.f32 %v2089_v33, %v2594_v30  ;;  %v2169_v1 = vadd.f32 %v2132_v63, %v2598_v31  ;;  %v2093_v35 = vadd.f32 %v2092_v42, %v2989_v40  ;;  %v2136_v9 = vadd.f32 %v2135_v54, %v2989_v40 }
 0x241   :  { %2230 = vst [vmem:[%s3316_s5 + $0xe0] sm:$0xff] %v2166_v25  ;;  %2232 = vst [vmem:[%s3316_s5 + $0xf0] sm:$0xff] %v2168_v51  ;;  %v2198_v50 = vadd.f32 %v2091_v53, %v2624_v43  ;;  %v2200_v55 = vadd.f32 %v2134_v29, %v2628_v44 }
 0x242   :  { %2231 = vst [vmem:[%s3316_s5 + $0xe8] sm:$0xff] %v2167_v59  ;;  %2233 = vst [vmem:[%s3316_s5 + $0xf8] sm:$0xff] %v2169_v1  ;;  %v2199_v40 = vadd.f32 %v2093_v35, %v2594_v30  ;;  %v2201_v7 = vadd.f32 %v2136_v9, %v2598_v31 }
 0x243   :  { %2262 = vst [vmem:[%s3316_s5 + $0x1e0] sm:$0xf] %v2198_v50  ;;  %2264 = vst [vmem:[%s3316_s5 + $0x1f0] sm:$0xf] %v2200_v55 }
 0x244   :  { %2263 = vst [vmem:[%s3316_s5 + $0x1e8] sm:$0xf] %v2199_v40  ;;  %2265 = vst [vmem:[%s3316_s5 + $0x1f8] sm:$0xf] %v2201_v7 }

</bundles_post_ra>
